<compile_context>
chip_gen: v6e
topology: v6e:2x2x1
jax: 0.10.0
libtpu: 0.0.40
codegen_flags: <defaults>
</compile_context>

<pallas_src>
import functools

import jax
import jax.numpy as jnp
from jax.experimental import pallas as pl
from jax.experimental.pallas import tpu as pltpu


BN_EPS = 1e-5
NEG_SLOPE = 0.01  # F.leaky_relu default


# --------------------------------------------------------------------------
# VMEM capacity / budgets
# --------------------------------------------------------------------------
_VMEM_CAP = None


def _vmem_capacity_bytes():
    """Per-core VMEM capacity; conservative 64 MiB (v7x) fallback."""
    global _VMEM_CAP
    if _VMEM_CAP is None:
        cap = None
        try:
            info = pltpu.get_tpu_info()
            cap = getattr(info, "vmem_capacity_bytes", None)
        except Exception:
            cap = None
        _VMEM_CAP = int(cap) if cap else 64 * 1024 * 1024
    return _VMEM_CAP


# --------------------------------------------------------------------------
# FUSED path: single kernel, x read from HBM once, two-pass batch variance.
# --------------------------------------------------------------------------
def _fused_kernel(x_ref, w_ref, g_ref, b_ref, o_ref, y_scr, sum_scr, ssq_scr):
    # x_ref: (N, Cin, HW)  w_ref: (Cout, Cin)  g_ref/b_ref: (Cout, 1)
    # o_ref: (N, Cout, HW) y_scr: (N, Cout, HW) f32  sum/ssq: (Cout, 1) f32
    n = x_ref.shape[0]
    hw = x_ref.shape[2]
    m = float(n * hw)

    # pass 1: 1x1 conv (MXU) -> VMEM scratch; accumulate per-channel sum(y).
    sum_scr[...] = jnp.zeros_like(sum_scr)
    for i in range(n):
        y = jnp.dot(w_ref[...], x_ref[i], preferred_element_type=jnp.float32)
        y_scr[i] = y
        sum_scr[...] += jnp.sum(y, axis=1, keepdims=True)
    mean = sum_scr[...] * (1.0 / m)                       # (Cout, 1)

    # pass 2: exact centered variance (no E[y^2]-E[y]^2 cancellation).
    ssq_scr[...] = jnp.zeros_like(ssq_scr)
    for i in range(n):
        c = y_scr[i] - mean
        ssq_scr[...] += jnp.sum(c * c, axis=1, keepdims=True)
    var = ssq_scr[...] * (1.0 / m)                        # (Cout, 1)

    a = g_ref[...] * jax.lax.rsqrt(var + BN_EPS)          # (Cout, 1)
    bias = b_ref[...] - a * mean                          # (Cout, 1)

    # pass 3: affine + leaky_relu, lane-dense store.
    for i in range(n):
        z = y_scr[i] * a + bias
        o_ref[i] = jnp.maximum(z, NEG_SLOPE * z).astype(o_ref.dtype)


def _fused_call(x3, w2, g1, b1, vmem_limit):
    N, Cin, HW = x3.shape
    Cout = w2.shape[0]
    return pl.pallas_call(
        _fused_kernel,
        out_shape=jax.ShapeDtypeStruct((N, Cout, HW), x3.dtype),
        grid=(1,),
        in_specs=[
            pl.BlockSpec((N, Cin, HW), lambda i: (0, 0, 0)),
            pl.BlockSpec((Cout, Cin), lambda i: (0, 0)),
            pl.BlockSpec((Cout, 1), lambda i: (0, 0)),
            pl.BlockSpec((Cout, 1), lambda i: (0, 0)),
        ],
        out_specs=pl.BlockSpec((N, Cout, HW), lambda i: (0, 0, 0)),
        scratch_shapes=[
            pltpu.VMEM((N, Cout, HW), jnp.float32),
            pltpu.VMEM((Cout, 1), jnp.float32),
            pltpu.VMEM((Cout, 1), jnp.float32),
        ],
        compiler_params=pltpu.CompilerParams(
            dimension_semantics=("arbitrary",),
            vmem_limit_bytes=vmem_limit),
    )(x3, w2, g1, b1)


# --------------------------------------------------------------------------
# TILED fallback: stats-from-x (sum + Gram), then folded conv+BN+leaky_relu.
# --------------------------------------------------------------------------
def _stats_kernel(x_ref, sumx_ref, gram_ref):
    # x_ref: (1, Cin, T); sumx_ref: (1, Cin, 1); gram_ref: (1, Cin, Cin)
    # Per-batch accumulator blocks (index depends only on n) -> the n grid
    # axis can be "parallel" (v7x 2-TC sharding); t axis is the reduction.
    @pl.when(pl.program_id(1) == 0)
    def _():
        sumx_ref[...] = jnp.zeros_like(sumx_ref)
        gram_ref[...] = jnp.zeros_like(gram_ref)

    xf = x_ref[0].astype(jnp.float32)                     # (Cin, T)
    sumx_ref[0] += jnp.sum(xf, axis=1, keepdims=True)
    # Gram = x x^T: deep-K (K=T) MXU matmul, contraction on dim 1 of both.
    gram_ref[0] += jax.lax.dot_general(
        xf, xf, (((1,), (1,)), ((), ())),
        preferred_element_type=jnp.float32)


def _apply_kernel(x_ref, w_ref, b_ref, o_ref):
    # x_ref: (1, Cin, T); w_ref: (Cout, Cin) already scaled by gamma*rsqrt(var+eps)
    # b_ref: (Cout, 1) fused bias; o_ref: (1, Cout, T) lane-dense output tile.
    y = jnp.dot(w_ref[...], x_ref[0], preferred_element_type=jnp.float32)
    y = y + b_ref[...]
    o_ref[0] = jnp.maximum(y, NEG_SLOPE * y).astype(o_ref.dtype)


def _plan_tiles(hw, cin, cout, budget_bytes):
    """Largest legal lane tile under the per-step VMEM budget.

    Returns (T, HW_padded).  Full extent when it fits; otherwise HW is padded
    to a multiple of 128 and T is the largest multiple-of-128 divisor of the
    padded extent that fits the (double-buffered x-tile + out-tile) budget.
    """
    bytes_per_lane = 2 * 4 * (cin + cout)    # double-buffered f32 x + out
    cap = max(128, budget_bytes // bytes_per_lane)
    if hw <= cap:
        return hw, hw
    hw_p = pl.cdiv(hw, 128) * 128
    best = 128
    t = 256
    limit = min(cap, hw_p)
    while t <= limit:
        if hw_p % t == 0:
            best = t
        t += 128
    return best, hw_p


def _tiled_call(x3, w2, g1, b1, tile_budget, vmem_limit):
    N, Cin, HW = x3.shape
    Cout = w2.shape[0]
    M = N * HW                                   # true element count for stats

    T, HW_p = _plan_tiles(HW, Cin, Cout, tile_budget)
    if HW_p != HW:
        # Zero padding is stats-safe: zeros contribute nothing to sum(x)/Gram.
        x3 = jnp.pad(x3, ((0, 0), (0, 0), (0, HW_p - HW)))
    nt = HW_p // T
    grid = (N, nt)

    # ---- phase 1: per-batch partial sum(x), Gram(x) = x x^T ----------------
    sumx, gram = pl.pallas_call(
        _stats_kernel,
        out_shape=(jax.ShapeDtypeStruct((N, Cin, 1), jnp.float32),
                   jax.ShapeDtypeStruct((N, Cin, Cin), jnp.float32)),
        grid=grid,
        in_specs=[pl.BlockSpec((1, Cin, T), lambda n, t: (n, 0, t))],
        out_specs=(pl.BlockSpec((1, Cin, 1), lambda n, t: (n, 0, 0)),
                   pl.BlockSpec((1, Cin, Cin), lambda n, t: (n, 0, 0))),
        compiler_params=pltpu.CompilerParams(
            dimension_semantics=("parallel", "arbitrary"),
            vmem_limit_bytes=vmem_limit),
    )(x3)

    # ---- tiny fold: BN stats from (sum_x, Gram); fold scale into W ---------
    # TODO(synk): tiled fallback still uses E[y^2]-E[y]^2 (via the Gram); the
    # default fused path uses an exact two-pass variance instead.
    w_f = w2.astype(jnp.float32)                           # (Cout, Cin)
    sum_x = jnp.sum(sumx, axis=0)[:, 0]                    # (Cin,)
    G = jnp.sum(gram, axis=0)                              # (Cin, Cin)
    sum_y = w_f @ sum_x                                    # (Cout,)
    mean = sum_y / M
    sum_y2 = jnp.sum((w_f @ G) * w_f, axis=1)              # diag(W G W^T)
    var = jnp.maximum(sum_y2 / M - mean * mean, 0.0)
    a = g1[:, 0] * jax.lax.rsqrt(var + BN_EPS)             # (Cout,)
    bias = (b1[:, 0] - a * mean).reshape(Cout, 1)
    w_folded = (w_f * a[:, None]).astype(x3.dtype)

    # ---- phase 2: y = (a*W) @ x + b, leaky_relu, lane-dense store ----------
    out3p = pl.pallas_call(
        _apply_kernel,
        out_shape=jax.ShapeDtypeStruct((N, Cout, HW_p), x3.dtype),
        grid=grid,
        in_specs=[
            pl.BlockSpec((1, Cin, T), lambda n, t: (n, 0, t)),
            pl.BlockSpec((Cout, Cin), lambda n, t: (0, 0)),
            pl.BlockSpec((Cout, 1), lambda n, t: (0, 0)),
        ],
        out_specs=pl.BlockSpec((1, Cout, T), lambda n, t: (n, 0, t)),
        compiler_params=pltpu.CompilerParams(
            dimension_semantics=("parallel", "parallel"),
            vmem_limit_bytes=vmem_limit),
    )(x3, w_folded, bias)

    if HW_p != HW:
        out3p = out3p[:, :, :HW]
    return out3p


# --------------------------------------------------------------------------
# Per-level wrapper (jitted: both pallas_calls + fold dispatch as one exec).
# --------------------------------------------------------------------------
@functools.partial(jax.jit, static_argnames=("force_path", "tile_budget_override"))
def channel_t_level(x_nchw, conv_w, gamma, beta,
                    force_path=None, tile_budget_override=None):
    """One ConvBNLayer(kernel_size=1, act='leaky_relu') forward via Pallas."""
    N, Cin, H, W = x_nchw.shape
    Cout = conv_w.shape[0]
    HW = H * W

    x3 = x_nchw.reshape(N, Cin, HW)               # free reshape, no transpose
    w2 = conv_w.reshape(Cout, Cin)
    g1 = gamma.astype(jnp.float32).reshape(Cout, 1)
    b1 = beta.astype(jnp.float32).reshape(Cout, 1)

    cap = _vmem_capacity_bytes()
    vmem_limit = max(32 * 1024 * 1024, min(cap * 3 // 4, 128 * 1024 * 1024))
    fused_budget = cap // 2
    tile_budget = tile_budget_override or min(12 * 1024 * 1024, cap // 5)

    # x (double-buffered) + f32 y scratch + out (double-buffered), in bytes.
    fused_footprint = 4 * N * HW * (2 * Cin + 3 * Cout) + 4 * Cout * (Cin + 4)
    if force_path == "fused":
        use_fused = True
    elif force_path == "tiled":
        use_fused = False
    else:
        use_fused = (fused_footprint <= fused_budget) and (N <= 16)

    if use_fused:
        out3 = _fused_call(x3, w2, g1, b1, vmem_limit)
    else:
        out3 = _tiled_call(x3, w2, g1, b1, tile_budget, vmem_limit)

    return out3.reshape(N, Cout, H, W)            # free reshape back to NCHW


def channel_t_forward(xs, params, force_path=None, tile_budget_override=None):
    """Channel_T.forward: list of feature maps -> list of (N, Cout, H, W)."""
    return [channel_t_level(x, p["w"], p["gamma"], p["beta"],
                            force_path=force_path,
                            tile_budget_override=tile_budget_override)
            for x, p in zip(xs, params)]


# ---------------- pure-JAX reference (mirrors the PyTorch graph) -------------
def _ref_level(x, conv_w, gamma, beta):
    Cout, Cin = conv_w.shape[0], conv_w.shape[1]
    y = jnp.einsum("nchw,oc->nohw", x.astype(jnp.float32),
                   conv_w.reshape(Cout, Cin).astype(jnp.float32))
    mean = y.mean(axis=(0, 2, 3), keepdims=True)
    var = ((y - mean) ** 2).mean(axis=(0, 2, 3), keepdims=True)
    y = (y - mean) / jnp.sqrt(var + BN_EPS)
    y = y * gamma[None, :, None, None] + beta[None, :, None, None]
    return jnp.where(y > 0, y, NEG_SLOPE * y)


if __name__ == "__main__":
    key = jax.random.PRNGKey(0)

    # 3 pyramid levels with shrinking spatial maps.
    in_channels = [8, 16, 32]
    out_channels = 16
    spatials = [48, 24, 12]
    batch = 2

    # Deterministic synthetic parameters (no checkpoint loading).
    params = []
    for cin in in_channels:
        key, kw, kg, kb = jax.random.split(key, 4)
        params.append({
            "w": 0.1 * jax.random.normal(kw, (out_channels, cin, 1, 1), jnp.float32),
            "gamma": 1.0 + 0.1 * jax.random.normal(kg, (out_channels,), jnp.float32),
            "beta": 0.1 * jax.random.normal(kb, (out_channels,), jnp.float32),
        })

    # Deterministic inputs.
    xs = []
    for cin, sp in zip(in_channels, spatials):
        key, kx = jax.random.split(key)
        xs.append(jax.random.normal(kx, (batch, cin, sp, sp), jnp.float32))

    refs = [_ref_level(x, p["w"], p["gamma"], p["beta"]) for x, p in zip(xs, params)]

    # Default path: fused single-pass kernel (x read from HBM once).
    outs = channel_t_forward(xs, params)
    outs = [jax.block_until_ready(o) for o in outs]
    for o, ref, sp in zip(outs, refs, spatials):
        assert o.shape == (batch, out_channels, sp, sp), o.shape
        assert jnp.allclose(o, ref, atol=1e-3, rtol=1e-3), "fused path mismatch"

    # Forced tiled fallback with a tiny per-step budget: exercises multi-tile
    # grids, lane padding (HW=576 -> 640) and the full-extent small-map case.
    outs_t = channel_t_forward(xs, params, force_path="tiled",
                               tile_budget_override=64 * 1024)
    outs_t = [jax.block_until_ready(o) for o in outs_t]
    for o, ref, sp in zip(outs_t, refs, spatials):
        assert o.shape == (batch, out_channels, sp, sp), o.shape
        assert jnp.allclose(o, ref, atol=2e-3, rtol=2e-3), "tiled path mismatch"

    print("KERNEL_OK")
</pallas_src>

<mosaic_0001>
module attributes {stable_mosaic.version = 11 : i64} {
  func.func @_fused_kernel(%arg0: i32, %arg1: memref<2x8x2304xf32, #tpu.memory_space<vmem>>, %arg2: memref<16x8xf32, #tpu.memory_space<vmem>>, %arg3: memref<16x1xf32, #tpu.memory_space<vmem>>, %arg4: memref<16x1xf32, #tpu.memory_space<vmem>>, %arg5: memref<2x16x2304xf32, #tpu.memory_space<vmem>>, %arg6: memref<2x16x2304xf32, #tpu.memory_space<vmem>>, %arg7: memref<16x1xf32, #tpu.memory_space<vmem>>, %arg8: memref<16x1xf32, #tpu.memory_space<vmem>>) attributes {dimension_semantics = [#tpu.dimension_semantics<arbitrary>], iteration_bounds = array<i64: 1>, scalar_prefetch = 0 : i64, scratch_operands = 3 : i64, tpu.core_type = #tpu.core_type<tc>, window_params = [{pipeline_mode = #tpu.pipeline_mode<synchronous>, transform_indices = @transform_0, window_bounds = array<i64: 2, 8, 2304>}, {pipeline_mode = #tpu.pipeline_mode<synchronous>, transform_indices = @transform_1, window_bounds = array<i64: 16, 8>}, {pipeline_mode = #tpu.pipeline_mode<synchronous>, transform_indices = @transform_2, window_bounds = array<i64: 16, 1>}, {pipeline_mode = #tpu.pipeline_mode<synchronous>, transform_indices = @transform_3, window_bounds = array<i64: 16, 1>}, {pipeline_mode = #tpu.pipeline_mode<synchronous>, transform_indices = @transform_4, window_bounds = array<i64: 2, 16, 2304>}]} {
    %cst = arith.constant 0.000000e+00 : f32
    %0 = vector.broadcast %cst : f32 to vector<16x1xf32>
    %c0 = arith.constant 0 : index
    %c0_0 = arith.constant 0 : index
    %1 = vector.load %arg7[%c0, %c0_0] : memref<16x1xf32, #tpu.memory_space<vmem>>, vector<16x1xf32>
    tpu.vector_store %arg7[%c0, %c0_0], %0 {strides = array<i32>} : memref<16x1xf32, #tpu.memory_space<vmem>>, vector<16x1xf32>,
    %c0_1 = arith.constant 0 : index
    %c0_2 = arith.constant 0 : index
    %2 = vector.load %arg2[%c0_1, %c0_2] : memref<16x8xf32, #tpu.memory_space<vmem>>, vector<16x8xf32>
    %c0_3 = arith.constant 0 : index
    %c0_4 = arith.constant 0 : index
    %c0_5 = arith.constant 0 : index
    %3 = vector.load %arg1[%c0_3, %c0_4, %c0_5] : memref<2x8x2304xf32, #tpu.memory_space<vmem>>, vector<1x8x2304xf32>
    %4 = vector.shape_cast %3 : vector<1x8x2304xf32> to vector<8x2304xf32>
    %cst_6 = arith.constant dense<0.000000e+00> : vector<16x2304xf32>
    %5 = tpu.matmul %2, %4, %cst_6 {dimension_numbers = #tpu.dot_dimension_numbers<[1], [0], [0], [1], [0, 0, 1, 1], [], []>} : vector<16x8xf32>, vector<8x2304xf32>, vector<16x2304xf32> -> vector<16x2304xf32>
    %c0_7 = arith.constant 0 : index
    %c0_8 = arith.constant 0 : index
    %c0_9 = arith.constant 0 : index
    %6 = vector.load %arg6[%c0_7, %c0_8, %c0_9] : memref<2x16x2304xf32, #tpu.memory_space<vmem>>, vector<1x16x2304xf32>
    %7 = vector.shape_cast %6 : vector<1x16x2304xf32> to vector<16x2304xf32>
    %8 = vector.shape_cast %5 : vector<16x2304xf32> to vector<1x16x2304xf32>
    tpu.vector_store %arg6[%c0_7, %c0_8, %c0_9], %8 {strides = array<i32>} : memref<2x16x2304xf32, #tpu.memory_space<vmem>>, vector<1x16x2304xf32>,
    %c0_10 = arith.constant 0 : index
    %c0_11 = arith.constant 0 : index
    %9 = vector.load %arg7[%c0_10, %c0_11] : memref<16x1xf32, #tpu.memory_space<vmem>>, vector<16x1xf32>
    %cst_12 = arith.constant dense<0.000000e+00> : vector<16xf32>
    %10 = vector.multi_reduction <add>, %5, %cst_12 [1] : vector<16x2304xf32> to vector<16xf32>
    %11 = vector.shape_cast %10 : vector<16xf32> to vector<16x1xf32>
    %12 = arith.addf %9, %11 : vector<16x1xf32>
    %c0_13 = arith.constant 0 : index
    %c0_14 = arith.constant 0 : index
    %13 = vector.load %arg7[%c0_13, %c0_14] : memref<16x1xf32, #tpu.memory_space<vmem>>, vector<16x1xf32>
    tpu.vector_store %arg7[%c0_13, %c0_14], %12 {strides = array<i32>} : memref<16x1xf32, #tpu.memory_space<vmem>>, vector<16x1xf32>,
    %c0_15 = arith.constant 0 : index
    %c0_16 = arith.constant 0 : index
    %14 = vector.load %arg2[%c0_15, %c0_16] : memref<16x8xf32, #tpu.memory_space<vmem>>, vector<16x8xf32>
    %c1 = arith.constant 1 : index
    %c0_17 = arith.constant 0 : index
    %c0_18 = arith.constant 0 : index
    %15 = vector.load %arg1[%c1, %c0_17, %c0_18] : memref<2x8x2304xf32, #tpu.memory_space<vmem>>, vector<1x8x2304xf32>
    %16 = vector.shape_cast %15 : vector<1x8x2304xf32> to vector<8x2304xf32>
    %cst_19 = arith.constant dense<0.000000e+00> : vector<16x2304xf32>
    %17 = tpu.matmul %14, %16, %cst_19 {dimension_numbers = #tpu.dot_dimension_numbers<[1], [0], [0], [1], [0, 0, 1, 1], [], []>} : vector<16x8xf32>, vector<8x2304xf32>, vector<16x2304xf32> -> vector<16x2304xf32>
    %c1_20 = arith.constant 1 : index
    %c0_21 = arith.constant 0 : index
    %c0_22 = arith.constant 0 : index
    %18 = vector.load %arg6[%c1_20, %c0_21, %c0_22] : memref<2x16x2304xf32, #tpu.memory_space<vmem>>, vector<1x16x2304xf32>
    %19 = vector.shape_cast %18 : vector<1x16x2304xf32> to vector<16x2304xf32>
    %20 = vector.shape_cast %17 : vector<16x2304xf32> to vector<1x16x2304xf32>
    tpu.vector_store %arg6[%c1_20, %c0_21, %c0_22], %20 {strides = array<i32>} : memref<2x16x2304xf32, #tpu.memory_space<vmem>>, vector<1x16x2304xf32>,
    %c0_23 = arith.constant 0 : index
    %c0_24 = arith.constant 0 : index
    %21 = vector.load %arg7[%c0_23, %c0_24] : memref<16x1xf32, #tpu.memory_space<vmem>>, vector<16x1xf32>
    %cst_25 = arith.constant dense<0.000000e+00> : vector<16xf32>
    %22 = vector.multi_reduction <add>, %17, %cst_25 [1] : vector<16x2304xf32> to vector<16xf32>
    %23 = vector.shape_cast %22 : vector<16xf32> to vector<16x1xf32>
    %24 = arith.addf %21, %23 : vector<16x1xf32>
    %c0_26 = arith.constant 0 : index
    %c0_27 = arith.constant 0 : index
    %25 = vector.load %arg7[%c0_26, %c0_27] : memref<16x1xf32, #tpu.memory_space<vmem>>, vector<16x1xf32>
    tpu.vector_store %arg7[%c0_26, %c0_27], %24 {strides = array<i32>} : memref<16x1xf32, #tpu.memory_space<vmem>>, vector<16x1xf32>,
    %c0_28 = arith.constant 0 : index
    %c0_29 = arith.constant 0 : index
    %26 = vector.load %arg7[%c0_28, %c0_29] : memref<16x1xf32, #tpu.memory_space<vmem>>, vector<16x1xf32>
    %cst_30 = arith.constant 2.17013891E-4 : f32
    %27 = vector.broadcast %cst_30 : f32 to vector<16x1xf32>
    %28 = arith.mulf %26, %27 : vector<16x1xf32>
    %cst_31 = arith.constant 0.000000e+00 : f32
    %29 = vector.broadcast %cst_31 : f32 to vector<16x1xf32>
    %c0_32 = arith.constant 0 : index
    %c0_33 = arith.constant 0 : index
    %30 = vector.load %arg8[%c0_32, %c0_33] : memref<16x1xf32, #tpu.memory_space<vmem>>, vector<16x1xf32>
    tpu.vector_store %arg8[%c0_32, %c0_33], %29 {strides = array<i32>} : memref<16x1xf32, #tpu.memory_space<vmem>>, vector<16x1xf32>,
    %c0_34 = arith.constant 0 : index
    %c0_35 = arith.constant 0 : index
    %c0_36 = arith.constant 0 : index
    %31 = vector.load %arg6[%c0_34, %c0_35, %c0_36] : memref<2x16x2304xf32, #tpu.memory_space<vmem>>, vector<1x16x2304xf32>
    %32 = vector.shape_cast %31 : vector<1x16x2304xf32> to vector<16x2304xf32>
    %33 = vector.broadcast %28 : vector<16x1xf32> to vector<16x2304xf32>
    %34 = arith.subf %32, %33 : vector<16x2304xf32>
    %c0_37 = arith.constant 0 : index
    %c0_38 = arith.constant 0 : index
    %35 = vector.load %arg8[%c0_37, %c0_38] : memref<16x1xf32, #tpu.memory_space<vmem>>, vector<16x1xf32>
    %36 = arith.mulf %34, %34 : vector<16x2304xf32>
    %cst_39 = arith.constant dense<0.000000e+00> : vector<16xf32>
    %37 = vector.multi_reduction <add>, %36, %cst_39 [1] : vector<16x2304xf32> to vector<16xf32>
    %38 = vector.shape_cast %37 : vector<16xf32> to vector<16x1xf32>
    %39 = arith.addf %35, %38 : vector<16x1xf32>
    %c0_40 = arith.constant 0 : index
    %c0_41 = arith.constant 0 : index
    %40 = vector.load %arg8[%c0_40, %c0_41] : memref<16x1xf32, #tpu.memory_space<vmem>>, vector<16x1xf32>
    tpu.vector_store %arg8[%c0_40, %c0_41], %39 {strides = array<i32>} : memref<16x1xf32, #tpu.memory_space<vmem>>, vector<16x1xf32>,
    %c1_42 = arith.constant 1 : index
    %c0_43 = arith.constant 0 : index
    %c0_44 = arith.constant 0 : index
    %41 = vector.load %arg6[%c1_42, %c0_43, %c0_44] : memref<2x16x2304xf32, #tpu.memory_space<vmem>>, vector<1x16x2304xf32>
    %42 = vector.shape_cast %41 : vector<1x16x2304xf32> to vector<16x2304xf32>
    %43 = vector.broadcast %28 : vector<16x1xf32> to vector<16x2304xf32>
    %44 = arith.subf %42, %43 : vector<16x2304xf32>
    %c0_45 = arith.constant 0 : index
    %c0_46 = arith.constant 0 : index
    %45 = vector.load %arg8[%c0_45, %c0_46] : memref<16x1xf32, #tpu.memory_space<vmem>>, vector<16x1xf32>
    %46 = arith.mulf %44, %44 : vector<16x2304xf32>
    %cst_47 = arith.constant dense<0.000000e+00> : vector<16xf32>
    %47 = vector.multi_reduction <add>, %46, %cst_47 [1] : vector<16x2304xf32> to vector<16xf32>
    %48 = vector.shape_cast %47 : vector<16xf32> to vector<16x1xf32>
    %49 = arith.addf %45, %48 : vector<16x1xf32>
    %c0_48 = arith.constant 0 : index
    %c0_49 = arith.constant 0 : index
    %50 = vector.load %arg8[%c0_48, %c0_49] : memref<16x1xf32, #tpu.memory_space<vmem>>, vector<16x1xf32>
    tpu.vector_store %arg8[%c0_48, %c0_49], %49 {strides = array<i32>} : memref<16x1xf32, #tpu.memory_space<vmem>>, vector<16x1xf32>,
    %c0_50 = arith.constant 0 : index
    %c0_51 = arith.constant 0 : index
    %51 = vector.load %arg8[%c0_50, %c0_51] : memref<16x1xf32, #tpu.memory_space<vmem>>, vector<16x1xf32>
    %cst_52 = arith.constant 2.17013891E-4 : f32
    %52 = vector.broadcast %cst_52 : f32 to vector<16x1xf32>
    %53 = arith.mulf %51, %52 : vector<16x1xf32>
    %c0_53 = arith.constant 0 : index
    %c0_54 = arith.constant 0 : index
    %54 = vector.load %arg3[%c0_53, %c0_54] : memref<16x1xf32, #tpu.memory_space<vmem>>, vector<16x1xf32>
    %cst_55 = arith.constant 9.99999974E-6 : f32
    %55 = vector.broadcast %cst_55 : f32 to vector<16x1xf32>
    %56 = arith.addf %53, %55 : vector<16x1xf32>
    %57 = math.rsqrt %56 : vector<16x1xf32>
    %58 = arith.mulf %54, %57 : vector<16x1xf32>
    %c0_56 = arith.constant 0 : index
    %c0_57 = arith.constant 0 : index
    %59 = vector.load %arg4[%c0_56, %c0_57] : memref<16x1xf32, #tpu.memory_space<vmem>>, vector<16x1xf32>
    %60 = arith.mulf %58, %28 : vector<16x1xf32>
    %61 = arith.subf %59, %60 : vector<16x1xf32>
    %c0_58 = arith.constant 0 : index
    %c0_59 = arith.constant 0 : index
    %c0_60 = arith.constant 0 : index
    %62 = vector.load %arg6[%c0_58, %c0_59, %c0_60] : memref<2x16x2304xf32, #tpu.memory_space<vmem>>, vector<1x16x2304xf32>
    %63 = vector.shape_cast %62 : vector<1x16x2304xf32> to vector<16x2304xf32>
    %64 = vector.broadcast %58 : vector<16x1xf32> to vector<16x2304xf32>
    %65 = arith.mulf %63, %64 : vector<16x2304xf32>
    %66 = vector.broadcast %61 : vector<16x1xf32> to vector<16x2304xf32>
    %67 = arith.addf %65, %66 : vector<16x2304xf32>
    %cst_61 = arith.constant 0.00999999977 : f32
    %68 = vector.broadcast %cst_61 : f32 to vector<16x2304xf32>
    %69 = arith.mulf %68, %67 : vector<16x2304xf32>
    %70 = arith.maximumf %67, %69 : vector<16x2304xf32>
    %c0_62 = arith.constant 0 : index
    %c0_63 = arith.constant 0 : index
    %c0_64 = arith.constant 0 : index
    %71 = vector.load %arg5[%c0_62, %c0_63, %c0_64] : memref<2x16x2304xf32, #tpu.memory_space<vmem>>, vector<1x16x2304xf32>
    %72 = vector.shape_cast %71 : vector<1x16x2304xf32> to vector<16x2304xf32>
    %73 = vector.shape_cast %70 : vector<16x2304xf32> to vector<1x16x2304xf32>
    tpu.vector_store %arg5[%c0_62, %c0_63, %c0_64], %73 {strides = array<i32>} : memref<2x16x2304xf32, #tpu.memory_space<vmem>>, vector<1x16x2304xf32>,
    %c1_65 = arith.constant 1 : index
    %c0_66 = arith.constant 0 : index
    %c0_67 = arith.constant 0 : index
    %74 = vector.load %arg6[%c1_65, %c0_66, %c0_67] : memref<2x16x2304xf32, #tpu.memory_space<vmem>>, vector<1x16x2304xf32>
    %75 = vector.shape_cast %74 : vector<1x16x2304xf32> to vector<16x2304xf32>
    %76 = vector.broadcast %58 : vector<16x1xf32> to vector<16x2304xf32>
    %77 = arith.mulf %75, %76 : vector<16x2304xf32>
    %78 = vector.broadcast %61 : vector<16x1xf32> to vector<16x2304xf32>
    %79 = arith.addf %77, %78 : vector<16x2304xf32>
    %cst_68 = arith.constant 0.00999999977 : f32
    %80 = vector.broadcast %cst_68 : f32 to vector<16x2304xf32>
    %81 = arith.mulf %80, %79 : vector<16x2304xf32>
    %82 = arith.maximumf %79, %81 : vector<16x2304xf32>
    %c1_69 = arith.constant 1 : index
    %c0_70 = arith.constant 0 : index
    %c0_71 = arith.constant 0 : index
    %83 = vector.load %arg5[%c1_69, %c0_70, %c0_71] : memref<2x16x2304xf32, #tpu.memory_space<vmem>>, vector<1x16x2304xf32>
    %84 = vector.shape_cast %83 : vector<1x16x2304xf32> to vector<16x2304xf32>
    %85 = vector.shape_cast %82 : vector<16x2304xf32> to vector<1x16x2304xf32>
    tpu.vector_store %arg5[%c1_69, %c0_70, %c0_71], %85 {strides = array<i32>} : memref<2x16x2304xf32, #tpu.memory_space<vmem>>, vector<1x16x2304xf32>,
    return
  }
  func.func @transform_0(%arg0: i32) -> (i32, i32, i32) {
    %c0_i32 = arith.constant 0 : i32
    %c0_i32_0 = arith.constant 0 : i32
    %c0_i32_1 = arith.constant 0 : i32
    %c0_i32_2 = arith.constant 0 : i32
    return %c0_i32, %c0_i32_0, %c0_i32_1 : i32, i32, i32
  }
  func.func @transform_1(%arg0: i32) -> (i32, i32) {
    %c0_i32 = arith.constant 0 : i32
    %c0_i32_0 = arith.constant 0 : i32
    %c0_i32_1 = arith.constant 0 : i32
    return %c0_i32, %c0_i32_0 : i32, i32
  }
  func.func @transform_2(%arg0: i32) -> (i32, i32) {
    %c0_i32 = arith.constant 0 : i32
    %c0_i32_0 = arith.constant 0 : i32
    %c0_i32_1 = arith.constant 0 : i32
    return %c0_i32, %c0_i32_0 : i32, i32
  }
  func.func @transform_3(%arg0: i32) -> (i32, i32) {
    %c0_i32 = arith.constant 0 : i32
    %c0_i32_0 = arith.constant 0 : i32
    %c0_i32_1 = arith.constant 0 : i32
    return %c0_i32, %c0_i32_0 : i32, i32
  }
  func.func @transform_4(%arg0: i32) -> (i32, i32, i32) {
    %c0_i32 = arith.constant 0 : i32
    %c0_i32_0 = arith.constant 0 : i32
    %c0_i32_1 = arith.constant 0 : i32
    %c0_i32_2 = arith.constant 0 : i32
    return %c0_i32, %c0_i32_0, %c0_i32_1 : i32, i32, i32
  }
}

</mosaic_0001>

<bundles_post_ra>
// kernel: channel_t_level.1
= control target key start
LH: loop header
LB: loop body
LE: loop exit
PB: predicated region body
PF: predicated region fallthrough
CT: control target
= control target key end

     0   :  { %v2514_v2 = vmov 0.0   ;;  %vm40_vm0 = vcmask 64512   ;;  %vm17_vm1 = vcmask 7168   ;;  %s3709_s0 = inlined_call_operand.vmem [shape: f32[2,8,2304], index: 0, kind: input, shape index: {}]   ;;  %s3710_s1 = inlined_call_operand.vmem [shape: f32[16,8], index: 1, kind: input, shape index: {}]   ;;  %s3711_s2 = inlined_call_operand.vmem [shape: f32[16,1], index: 2, kind: input, shape index: {}]   ;;  %s3712_s3 = inlined_call_operand.vmem [shape: f32[16,1], index: 3, kind: input, shape index: {}]   ;;  %s3713_s4 = inlined_call_operand.vmem [shape: f32[2,16,2304], index: 4, kind: output, shape index: {}]  }
   0x1   :  { %v23_v0 = vld [vmem:[%s3709_s0 + $0x8] sm:$0xff]  ;;  %v22_v1 = vld [vmem:[%s3709_s0] sm:$0xff]  ;;  %111 = vmatprep.mubr.f32.mxu0 %v2514_v2  ;;  %188 = vmatprep.mubr.f32.mxu1 %v2514_v2  ;;  %v25_v5 = vld [vmem:[%s3709_s0 + $0x18] sm:$0xff]  ;;  %18 = vst.msk [vmem:[#allocation3] sm:$0xff] %vm17_vm1, %v2514_v2 }
   0x2   :  { %v2551_v3 = vld [vmem:[%s3710_s1] sm:$0xff]  ;;  %77 = vmatprep.subr.mxu0 %v23_v0  ;;  %v27_v4 = vld [vmem:[%s3709_s0 + $0x28] sm:$0xff]  ;;  %154 = vmatprep.subr.mxu1 %v25_v5  ;;  %v24_v7 = vld [vmem:[%s3709_s0 + $0x10] sm:$0xff]  ;;  %19 = vst.msk [vmem:[#allocation3 + $0x8] sm:$0xff] %vm17_vm1, %v2514_v2 }
   0x3   :  { %v26_v6 = vld [vmem:[%s3709_s0 + $0x20] sm:$0xff]  ;;  %78 = vmatpush1.msra.mxu0 %v22_v1  ;;  %v29_v8 = vld [vmem:[%s3709_s0 + $0x38] sm:$0xff]  ;;  %155 = vmatpush1.msra.mxu1 %v24_v7  ;;  %v2574_v9 = vld [vmem:[%s3710_s1 + $0x8] sm:$0xff]  ;;  %1625 = vst.msk [vmem:[#allocation4] sm:$0xff] %vm17_vm1, %v2514_v2 }
   0x4   :  { %2416 = vmatmul.mubr.msk.f32.vlgmr.msra.gmra.mxu0 %vm40_vm0, %v2551_v3  ;;  %231 = vmatprep.subr.mxu0 %v27_v4  ;;  %v28_v10 = vld [vmem:[%s3709_s0 + $0x30] sm:$0xff]  ;;  %v31_v11 = vld [vmem:[%s3709_s0 + $0x48] sm:$0xff]  ;;  %v33_v12 = vld [vmem:[%s3709_s0 + $0x58] sm:$0xff]  ;;  %1626 = vst.msk [vmem:[#allocation4 + $0x8] sm:$0xff] %vm17_vm1, %v2514_v2 }
   0x5   :  { %232 = vmatpush1.msra.mxu0 %v26_v6  ;;  %117 = vmatprep.mubr.f32.mxu0 %v2514_v2  ;;  %v30_v13 = vld [vmem:[%s3709_s0 + $0x40] sm:$0xff]  ;;  %v35_v14 = vld [vmem:[%s3709_s0 + $0x68] sm:$0xff]  ;;  %v32_v15 = vld [vmem:[%s3709_s0 + $0x50] sm:$0xff] }
   0x6   :  { %2418 = vmatmul.mubr.msk.f32.vlgmr.msra.gmra.mxu1 %vm40_vm0, %v2551_v3  ;;  %308 = vmatprep.subr.mxu1 %v29_v8  ;;  %v37_v16 = vld [vmem:[%s3709_s0 + $0x78] sm:$0xff]  ;;  %v34_v17 = vld [vmem:[%s3709_s0 + $0x60] sm:$0xff]  ;;  %v39_v18 = vld [vmem:[%s3709_s0 + $0x88] sm:$0xff] }
   0x7   :  { %194 = vmatprep.mubr.f32.mxu1 %v2514_v2  ;;  %309 = vmatpush1.msra.mxu1 %v28_v10  ;;  %v36_v19 = vld [vmem:[%s3709_s0 + $0x70] sm:$0xff]  ;;  %v2435_v20 = vld [vmem:[%s3709_s0 + $0x98] sm:$0xff]  ;;  %v38_v21 = vld [vmem:[%s3709_s0 + $0x80] sm:$0xff] }
   0x8   :  { %2417 = vmatmul.mubr.msk.f32.gmra.mxu0 %vm40_vm0, %v2574_v9  ;;  %385 = vmatprep.subr.mxu0 %v31_v11  ;;  %v2437_v22 = vld [vmem:[%s3709_s0 + $0xa8] sm:$0xff]  ;;  %v2434_v23 = vld [vmem:[%s3709_s0 + $0x90] sm:$0xff]  ;;  %v2439_v24 = vld [vmem:[%s3709_s0 + $0xb8] sm:$0xff] }
   0x9   :  { %265 = vmatprep.mubr.f32.mxu0 %v2514_v2  ;;  %462 = vmatprep.subr.mxu1 %v33_v12  ;;  %v2436_v25 = vld [vmem:[%s3709_s0 + $0xa0] sm:$0xff]  ;;  %v2441_v26 = vld [vmem:[%s3709_s0 + $0xc8] sm:$0xff]  ;;  %v2438_v27 = vld [vmem:[%s3709_s0 + $0xb0] sm:$0xff] }
   0xa   :  { %2419 = vmatmul.mubr.msk.f32.gmra.mxu1 %vm40_vm0, %v2574_v9  ;;  %v2443_v28 = vld [vmem:[%s3709_s0 + $0xd8] sm:$0xff]  ;;  %v2440_v29 = vld [vmem:[%s3709_s0 + $0xc0] sm:$0xff]  ;;  %v2445_v30 = vld [vmem:[%s3709_s0 + $0xe8] sm:$0xff] }
   0xb   :  { %342 = vmatprep.mubr.f32.mxu1 %v2514_v2  ;;  %v2442_v31 = vld [vmem:[%s3709_s0 + $0xd0] sm:$0xff]  ;;  %v2447_v32 = vld [vmem:[%s3709_s0 + $0xf8] sm:$0xff]  ;;  %v2444_v33 = vld [vmem:[%s3709_s0 + $0xe0] sm:$0xff] }
   0xc   :  { %2420 = vmatmul.mubr.msk.f32.vlgmr.msra.gmra.mxu0 %vm40_vm0, %v2551_v3  ;;  %v2449_v34 = vld [vmem:[%s3709_s0 + $0x108] sm:$0xff]  ;;  %v2446_v35 = vld [vmem:[%s3709_s0 + $0xf0] sm:$0xff]  ;;  %v2451_v36 = vld [vmem:[%s3709_s0 + $0x118] sm:$0xff] }
   0xd   :  { %386 = vmatpush1.msra.mxu0 %v30_v13  ;;  %271 = vmatprep.mubr.f32.mxu0 %v2514_v2  ;;  %v2448_v37 = vld [vmem:[%s3709_s0 + $0x100] sm:$0xff]  ;;  %v2450_v38 = vld [vmem:[%s3709_s0 + $0x110] sm:$0xff] }
   0xe   :  { %2422 = vmatmul.mubr.msk.f32.vlgmr.msra.gmra.mxu1 %vm40_vm0, %v2551_v3  ;;  %539 = vmatprep.subr.mxu0 %v35_v14 }
   0xf   :  { %463 = vmatpush1.msra.mxu1 %v32_v15  ;;  %348 = vmatprep.mubr.f32.mxu1 %v2514_v2 }
  0x10   :  { %2421 = vmatmul.mubr.msk.f32.gmra.mxu0 %vm40_vm0, %v2574_v9  ;;  %616 = vmatprep.subr.mxu1 %v37_v16 }
  0x11   :  { %419 = vmatprep.mubr.f32.mxu0 %v2514_v2 }
  0x12   :  { %2423 = vmatmul.mubr.msk.f32.gmra.mxu1 %vm40_vm0, %v2574_v9 }
  0x13   :  { %496 = vmatprep.mubr.f32.mxu1 %v2514_v2 }
  0x14   :  { %2424 = vmatmul.mubr.msk.f32.vlgmr.msra.gmra.mxu0 %vm40_vm0, %v2551_v3 }
  0x15   :  { %540 = vmatpush1.msra.mxu0 %v34_v17  ;;  %425 = vmatprep.mubr.f32.mxu0 %v2514_v2 }
  0x16   :  { %2426 = vmatmul.mubr.msk.f32.vlgmr.msra.gmra.mxu1 %vm40_vm0, %v2551_v3  ;;  %693 = vmatprep.subr.mxu0 %v39_v18 }
  0x17   :  { %617 = vmatpush1.msra.mxu1 %v36_v19  ;;  %502 = vmatprep.mubr.f32.mxu1 %v2514_v2 }
  0x18   :  { %2425 = vmatmul.mubr.msk.f32.gmra.mxu0 %vm40_vm0, %v2574_v9  ;;  %877 = vmatprep.subr.mxu1 %v2435_v20 }
  0x19   :  { %573 = vmatprep.mubr.f32.mxu0 %v2514_v2 }
  0x1a   :  { %2427 = vmatmul.mubr.msk.f32.gmra.mxu1 %vm40_vm0, %v2574_v9 }
  0x1b   :  { %650 = vmatprep.mubr.f32.mxu1 %v2514_v2 }
  0x1c   :  { %2428 = vmatmul.mubr.msk.f32.vlgmr.msra.gmra.mxu0 %vm40_vm0, %v2551_v3 }
  0x1d   :  { %694 = vmatpush1.msra.mxu0 %v38_v21  ;;  %579 = vmatprep.mubr.f32.mxu0 %v2514_v2 }
  0x1e   :  { %2430 = vmatmul.mubr.msk.f32.vlgmr.msra.gmra.mxu1 %vm40_vm0, %v2551_v3  ;;  %954 = vmatprep.subr.mxu0 %v2437_v22 }
  0x1f   :  { %878 = vmatpush1.msra.mxu1 %v2434_v23  ;;  %656 = vmatprep.mubr.f32.mxu1 %v2514_v2 }
  0x20   :  { %2429 = vmatmul.mubr.msk.f32.gmra.mxu0 %vm40_vm0, %v2574_v9  ;;  %1031 = vmatprep.subr.mxu1 %v2439_v24 }
  0x21   :  { %727 = vmatprep.mubr.f32.mxu0 %v2514_v2 }
  0x22   :  { %2431 = vmatmul.mubr.msk.f32.gmra.mxu1 %vm40_vm0, %v2574_v9 }
  0x23   :  { %911 = vmatprep.mubr.f32.mxu1 %v2514_v2 }
  0x24   :  { %2432 = vmatmul.mubr.msk.f32.vlgmr.msra.gmra.mxu0 %vm40_vm0, %v2551_v3 }
  0x25   :  { %955 = vmatpush1.msra.mxu0 %v2436_v25  ;;  %733 = vmatprep.mubr.f32.mxu0 %v2514_v2 }
  0x26   :  { %2452 = vmatmul.mubr.msk.f32.vlgmr.msra.gmra.mxu1 %vm40_vm0, %v2551_v3  ;;  %1108 = vmatprep.subr.mxu0 %v2441_v26 }
  0x27   :  { %1032 = vmatpush1.msra.mxu1 %v2438_v27  ;;  %917 = vmatprep.mubr.f32.mxu1 %v2514_v2 }
  0x28   :  { %2433 = vmatmul.mubr.msk.f32.gmra.mxu0 %vm40_vm0, %v2574_v9  ;;  %1185 = vmatprep.subr.mxu1 %v2443_v28 }
  0x29   :  { %988 = vmatprep.mubr.f32.mxu0 %v2514_v2 }
  0x2a   :  { %2453 = vmatmul.mubr.msk.f32.gmra.mxu1 %vm40_vm0, %v2574_v9 }
  0x2b   :  { %1065 = vmatprep.mubr.f32.mxu1 %v2514_v2 }
  0x2c   :  { %2454 = vmatmul.mubr.msk.f32.vlgmr.msra.gmra.mxu0 %vm40_vm0, %v2551_v3 }
  0x2d   :  { %1109 = vmatpush1.msra.mxu0 %v2440_v29  ;;  %994 = vmatprep.mubr.f32.mxu0 %v2514_v2 }
  0x2e   :  { %2456 = vmatmul.mubr.msk.f32.vlgmr.msra.gmra.mxu1 %vm40_vm0, %v2551_v3  ;;  %1262 = vmatprep.subr.mxu0 %v2445_v30 }
  0x2f   :  { %1186 = vmatpush1.msra.mxu1 %v2442_v31  ;;  %1071 = vmatprep.mubr.f32.mxu1 %v2514_v2 }
  0x30   :  { %2455 = vmatmul.mubr.msk.f32.gmra.mxu0 %vm40_vm0, %v2574_v9  ;;  %1339 = vmatprep.subr.mxu1 %v2447_v32 }
  0x31   :  { %1142 = vmatprep.mubr.f32.mxu0 %v2514_v2 }
  0x32   :  { %2457 = vmatmul.mubr.msk.f32.gmra.mxu1 %vm40_vm0, %v2574_v9 }
  0x33   :  { %1219 = vmatprep.mubr.f32.mxu1 %v2514_v2 }
  0x34   :  { %2458 = vmatmul.mubr.msk.f32.vlgmr.msra.gmra.mxu0 %vm40_vm0, %v2551_v3 }
  0x35   :  { %1263 = vmatpush1.msra.mxu0 %v2444_v33  ;;  %1148 = vmatprep.mubr.f32.mxu0 %v2514_v2 }
  0x36   :  { %2460 = vmatmul.mubr.msk.f32.vlgmr.msra.gmra.mxu1 %vm40_vm0, %v2551_v3  ;;  %1416 = vmatprep.subr.mxu0 %v2449_v34 }
  0x37   :  { %1340 = vmatpush1.msra.mxu1 %v2446_v35  ;;  %1225 = vmatprep.mubr.f32.mxu1 %v2514_v2 }
  0x38   :  { %2459 = vmatmul.mubr.msk.f32.gmra.mxu0 %vm40_vm0, %v2574_v9  ;;  %1493 = vmatprep.subr.mxu1 %v2451_v36 }
  0x39   :  { %1296 = vmatprep.mubr.f32.mxu0 %v2514_v2 }
  0x3a   :  { %2461 = vmatmul.mubr.msk.f32.gmra.mxu1 %vm40_vm0, %v2574_v9 }
  0x3b   :  { %1373 = vmatprep.mubr.f32.mxu1 %v2514_v2 }
  0x3c   :  { %2462 = vmatmul.mubr.msk.f32.vlgmr.msra.gmra.mxu0 %vm40_vm0, %v2551_v3 }
  0x3d   :  { %1417 = vmatpush1.msra.mxu0 %v2448_v37  ;;  %1302 = vmatprep.mubr.f32.mxu0 %v2514_v2 }
  0x3e   :  { %2464 = vmatmul.mubr.msk.f32.vlgmr.msra.gmra.mxu1 %vm40_vm0, %v2551_v3 }
  0x3f   :  { %1494 = vmatpush1.msra.mxu1 %v2450_v38  ;;  %1379 = vmatprep.mubr.f32.mxu1 %v2514_v2 }
  0x40   :  { %2463 = vmatmul.mubr.msk.f32.gmra.mxu0 %vm40_vm0, %v2574_v9 }
  0x41   :  { %1450 = vmatprep.mubr.f32.mxu0 %v2514_v2 }
  0x42   :  { %2465 = vmatmul.mubr.msk.f32.gmra.mxu1 %vm40_vm0, %v2574_v9 }
  0x43   :  { %1527 = vmatprep.mubr.f32.mxu1 %v2514_v2 }
  0x44   :  { %2466 = vmatmul.mubr.msk.f32.vlgmr.msra.gmra.mxu0 %vm40_vm0, %v2551_v3 }
  0x45   :  { %1456 = vmatprep.mubr.f32.mxu0 %v2514_v2 }
  0x46   :  { %2468 = vmatmul.mubr.msk.f32.vlgmr.msra.gmra.mxu1 %vm40_vm0, %v2551_v3 }
  0x47   :  { %1533 = vmatprep.mubr.f32.mxu1 %v2514_v2 }
  0x48   :  { %2467 = vmatmul.mubr.msk.f32.gmra.mxu0 %vm40_vm0, %v2574_v9 }
  0x4a   :  { %2469 = vmatmul.mubr.msk.f32.gmra.mxu1 %vm40_vm0, %v2574_v9 }
  0xc4   :  { %v2775_v39 = vpop.f32.mrf.mxu0 }
  0xc5   :  { %3788 = vst [vmem:[#allocation5_spill] sm:$0xff] %v2775_v39 }
  0xc6   :  { %v2777_v40 = vpop.f32.mrf.mxu0  ;;  %v2779_v41 = vpop.f32.mrf.mxu1 }
  0xc7   :  { %3789 = vst [vmem:[#allocation6_spill] sm:$0xff] %v2777_v40  ;;  %3790 = vst [vmem:[#allocation7_spill] sm:$0xff] %v2779_v41  ;;  %v778_v42 = vadd.f32 %v2777_v40, %v2775_v39 }
  0xc8   :  { %v2783_v43 = vpop.f32.mrf.mxu0  ;;  %v2785_v44 = vpop.f32.mrf.mxu1 }
  0xc9   :  { %3791 = vst [vmem:[#allocation8_spill] sm:$0xff] %v2783_v43  ;;  %3792 = vst [vmem:[#allocation9_spill] sm:$0xff] %v2785_v44  ;;  %v779_v45 = vadd.f32 %v778_v42, %v2779_v41 }
  0xca   :  { %v2788_v46 = vpop.f32.mrf.mxu0  ;;  %v2790_v47 = vpop.f32.mrf.mxu1 }
  0xcb   :  { %3793 = vst [vmem:[#allocation10_spill] sm:$0xff] %v2788_v46  ;;  %3794 = vst [vmem:[#allocation11_spill] sm:$0xff] %v2790_v47  ;;  %v780_v48 = vadd.f32 %v779_v45, %v2785_v44  ;;  %v797_v49 = vadd.f32 %v2788_v46, %v2783_v43 }
  0xcc   :  { %v2795_v50 = vpop.f32.mrf.mxu0  ;;  %v2797_v51 = vpop.f32.mrf.mxu1 }
  0xcd   :  { %3795 = vst [vmem:[#allocation12_spill] sm:$0xff] %v2797_v51  ;;  %v798_v52 = vadd.f32 %v797_v49, %v2790_v47  ;;  %v781_v53 = vadd.f32 %v780_v48, %v2795_v50 }
  0xce   :  { %v2801_v54 = vpop.f32.mrf.mxu0  ;;  %v2803_v55 = vpop.f32.mrf.mxu1 }
  0xcf   :  { %3796 = vst [vmem:[#allocation13_spill] sm:$0xff] %v2801_v54  ;;  %3797 = vst [vmem:[#allocation14_spill] sm:$0xff] %v2803_v55  ;;  %v799_v56 = vadd.f32 %v798_v52, %v2797_v51  ;;  %v782_v57 = vadd.f32 %v781_v53, %v2801_v54 }
  0xd0   :  { %v2807_v58 = vpop.f32.mrf.mxu0  ;;  %v2809_v59 = vpop.f32.mrf.mxu1 }
  0xd1   :  { %3798 = vst [vmem:[#allocation15_spill] sm:$0xff] %v2807_v58  ;;  %v783_v60 = vadd.f32 %v782_v57, %v2803_v55  ;;  %v800_v61 = vadd.f32 %v799_v56, %v2807_v58 }
  0xd2   :  { %v2813_v62 = vpop.f32.mrf.mxu0  ;;  %v2815_v63 = vpop.f32.mrf.mxu1 }
  0xd3   :  { %3799 = vst [vmem:[#allocation16_spill] sm:$0xff] %v2813_v62  ;;  %3800 = vst [vmem:[#allocation17_spill] sm:$0xff] %v2815_v63  ;;  %v784_v0 = vadd.f32 %v783_v60, %v2809_v59  ;;  %v801_v1 = vadd.f32 %v800_v61, %v2813_v62 }
  0xd4   :  { %v2819_v2 = vpop.f32.mrf.mxu0  ;;  %v2821_v3 = vpop.f32.mrf.mxu1 }
  0xd5   :  { %v802_v4 = vadd.f32 %v801_v1, %v2815_v63  ;;  %v785_v5 = vadd.f32 %v784_v0, %v2819_v2 }
  0xd6   :  { %v2825_v6 = vpop.f32.mrf.mxu0  ;;  %v2827_v7 = vpop.f32.mrf.mxu1 }
  0xd7   :  { %3801 = vst [vmem:[#allocation18_spill] sm:$0xff] %v2827_v7  ;;  %v803_v8 = vadd.f32 %v802_v4, %v2821_v3  ;;  %v786_v9 = vadd.f32 %v785_v5, %v2825_v6 }
  0xd8   :  { %v2831_v10 = vpop.f32.mrf.mxu0  ;;  %v2833_v11 = vpop.f32.mrf.mxu1 }
  0xd9   :  { %3802 = vst [vmem:[#allocation19_spill] sm:$0xff] %v2831_v10  ;;  %3803 = vst [vmem:[#allocation20_spill] sm:$0xff] %v2833_v11  ;;  %v787_v12 = vadd.f32 %v786_v9, %v2827_v7  ;;  %v804_v13 = vadd.f32 %v803_v8, %v2831_v10 }
  0xda   :  { %v2837_v14 = vpop.f32.mrf.mxu0  ;;  %v2839_v15 = vpop.f32.mrf.mxu1 }
  0xdb   :  { %v788_v16 = vadd.f32 %v787_v12, %v2833_v11  ;;  %v805_v17 = vadd.f32 %v804_v13, %v2837_v14 }
  0xdc   :  { %v2843_v18 = vpop.f32.mrf.mxu0  ;;  %v2845_v19 = vpop.f32.mrf.mxu1 }
  0xdd   :  { %3804 = vst [vmem:[#allocation21_spill] sm:$0xff] %v2843_v18  ;;  %3805 = vst [vmem:[#allocation22_spill] sm:$0xff] %v2845_v19  ;;  %v806_v20 = vadd.f32 %v805_v17, %v2839_v15  ;;  %v789_v21 = vadd.f32 %v788_v16, %v2843_v18 }
  0xde   :  { %v2849_v22 = vpop.f32.mrf.mxu0  ;;  %v2851_v23 = vpop.f32.mrf.mxu1 }
  0xdf   :  { %v807_v24 = vadd.f32 %v806_v20, %v2845_v19  ;;  %v790_v25 = vadd.f32 %v789_v21, %v2849_v22 }
  0xe0   :  { %v2855_v26 = vpop.f32.mrf.mxu0  ;;  %v2857_v27 = vpop.f32.mrf.mxu1 }
  0xe1   :  { %3806 = vst [vmem:[#allocation23_spill] sm:$0xff] %v2855_v26  ;;  %3807 = vst [vmem:[#allocation24_spill] sm:$0xff] %v2857_v27  ;;  %v791_v28 = vadd.f32 %v790_v25, %v2851_v23  ;;  %v808_v29 = vadd.f32 %v807_v24, %v2855_v26 }
  0xe2   :  { %v2861_v30 = vpop.f32.mrf.mxu0  ;;  %v2863_v31 = vpop.f32.mrf.mxu1 }
  0xe3   :  { %3808 = vst [vmem:[#allocation25_spill] sm:$0xff] %v2861_v30  ;;  %3809 = vst [vmem:[#allocation26_spill] sm:$0xff] %v2863_v31  ;;  %v792_v32 = vadd.f32 %v791_v28, %v2857_v27  ;;  %v809_v33 = vadd.f32 %v808_v29, %v2861_v30 }
  0xe4   :  { %v2867_v34 = vpop.f32.mrf.mxu0  ;;  %v2869_v35 = vpop.f32.mrf.mxu1 }
  0xe5   :  { %3810 = vst [vmem:[#allocation27_spill] sm:$0xff] %v2869_v35  ;;  %v810_v36 = vadd.f32 %v809_v33, %v2863_v31  ;;  %v793_v37 = vadd.f32 %v792_v32, %v2867_v34 }
  0xe6   :  { %v2873_v38 = vpop.f32.mrf.mxu0  ;;  %v2875_v42 = vpop.f32.mrf.mxu1 }
  0xe7   :  { %3811 = vst [vmem:[#allocation28_spill] sm:$0xff] %v2875_v42  ;;  %v811_v45 = vadd.f32 %v810_v36, %v2869_v35  ;;  %v794_v48 = vadd.f32 %v793_v37, %v2873_v38 }
  0xe8   :  { %v2879_v49 = vpop.f32.mrf.mxu0  ;;  %v2881_v52 = vpop.f32.mrf.mxu1 }
  0xe9   :  { %3812 = vst [vmem:[#allocation29_spill] sm:$0xff] %v2879_v49  ;;  %3813 = vst [vmem:[#allocation30_spill] sm:$0xff] %v2881_v52  ;;  %795 = vadd.xlane.f32.xlu0 %v794_v48  ;;  %v812_v53 = vadd.f32 %v811_v45, %v2879_v49  ;;  %v1579_v60 = vadd.f32 %v2881_v52, %v2875_v42 }
  0xea   :  { %v2884_v56 = vpop.f32.mrf.mxu0  ;;  %v2886_v57 = vpop.f32.mrf.mxu1 }
  0xeb   :  { %3814 = vst [vmem:[#allocation31_spill] sm:$0xff] %v2884_v56  ;;  %3815 = vst [vmem:[#allocation32_spill] sm:$0xff] %v2886_v57  ;;  %v813_v61 = vadd.f32 %v812_v53, %v2884_v56 }
  0xec   :  { %v2891_v0 = vpop.f32.mrf.mxu0  ;;  %v2893_v1 = vpop.f32.mrf.mxu1 }
  0xed   :  { %3816 = vst [vmem:[#allocation33_spill] sm:$0xff] %v2893_v1  ;;  %v1580_v4 = vadd.f32 %v1579_v60, %v2891_v0  ;;  %814 = vadd.xlane.f32.xlu0 %v813_v61  ;;  %v1598_v9 = vadd.f32 %v2893_v1, %v2886_v57 }
  0xee   :  { %v2896_v5 = vpop.f32.mrf.mxu0  ;;  %v2898_v8 = vpop.f32.mrf.mxu1 }
  0xef   :  { %v1581_v12 = vadd.f32 %v1580_v4, %v2896_v5 }
  0xf0   :  { %v2903_v13 = vpop.f32.mrf.mxu0  ;;  %v2905_v16 = vpop.f32.mrf.mxu1 }
  0xf1   :  { %3817 = vst [vmem:[#allocation34_spill] sm:$0xff] %v2903_v13  ;;  %v1582_v17 = vadd.f32 %v1581_v12, %v2898_v8  ;;  %v1599_v20 = vadd.f32 %v1598_v9, %v2903_v13 }
  0xf2   :  { %v2909_v21 = vpop.f32.mrf.mxu0  ;;  %v2911_v24 = vpop.f32.mrf.mxu1 }
  0xf3   :  { %3818 = vst [vmem:[#allocation35_spill] sm:$0xff] %v2909_v21  ;;  %3819 = vst [vmem:[#allocation36_spill] sm:$0xff] %v2911_v24  ;;  %v1583_v25 = vadd.f32 %v1582_v17, %v2905_v16  ;;  %v1600_v28 = vadd.f32 %v1599_v20, %v2909_v21 }
  0xf4   :  { %v2915_v29 = vpop.f32.mrf.mxu0  ;;  %v2917_v32 = vpop.f32.mrf.mxu1 }
  0xf5   :  { %3820 = vst [vmem:[#allocation37_spill] sm:$0xff] %v2917_v32  ;;  %v1601_v33 = vadd.f32 %v1600_v28, %v2911_v24  ;;  %v1584_v36 = vadd.f32 %v1583_v25, %v2915_v29 }
  0xf6   :  { %v2921_v37 = vpop.f32.mrf.mxu0  ;;  %v2923_v45 = vpop.f32.mrf.mxu1 }
  0xf7   :  { %v1602_v48 = vadd.f32 %v1601_v33, %v2917_v32  ;;  %v1585_v53 = vadd.f32 %v1584_v36, %v2921_v37 }
  0xf8   :  { %v2927_v60 = vpop.f32.mrf.mxu0  ;;  %v2929_v61 = vpop.f32.mrf.mxu1 }
  0xf9   :  { %3821 = vst [vmem:[#allocation38_spill] sm:$0xff] %v2927_v60  ;;  %v1586_v4 = vadd.f32 %v1585_v53, %v2923_v45  ;;  %v1603_v9 = vadd.f32 %v1602_v48, %v2927_v60 }
  0xfa   :  { %v2933_v12 = vpop.f32.mrf.mxu0  ;;  %v2935_v17 = vpop.f32.mrf.mxu1 }
  0xfb   :  { %3822 = vst [vmem:[#allocation39_spill] sm:$0xff] %v2933_v12  ;;  %3823 = vst [vmem:[#allocation40_spill] sm:$0xff] %v2935_v17  ;;  %v1587_v20 = vadd.f32 %v1586_v4, %v2929_v61  ;;  %v1604_v25 = vadd.f32 %v1603_v9, %v2933_v12 }
  0xfc   :  { %v2939_v28 = vpop.f32.mrf.mxu0  ;;  %v2941_v33 = vpop.f32.mrf.mxu1 }
  0xfd   :  { %3824 = vst [vmem:[#allocation41_spill] sm:$0xff] %v2939_v28  ;;  %3825 = vst [vmem:[#allocation42_spill] sm:$0xff] %v2941_v33  ;;  %v1605_v36 = vadd.f32 %v1604_v25, %v2935_v17  ;;  %v1588_v32 = vadd.f32 %v1587_v20, %v2939_v28 }
  0xfe   :  { %v2945_v24 = vpop.f32.mrf.mxu0  ;;  %v2947_v53 = vpop.f32.mrf.mxu1 }
  0xff   :  { %3826 = vst [vmem:[#allocation43_spill] sm:$0xff] %v2945_v24  ;;  %3827 = vst [vmem:[#allocation44_spill] sm:$0xff] %v2947_v53  ;;  %v1606_v48 = vadd.f32 %v1605_v36, %v2941_v33  ;;  %v1589_v60 = vadd.f32 %v1588_v32, %v2945_v24 }
 0x100   :  { %v2951_v21 = vpop.f32.mrf.mxu0  ;;  %v2953_v4 = vpop.f32.mrf.mxu1 }
 0x101   :  { %3828 = vst [vmem:[#allocation45_spill] sm:$0xff] %v2951_v21  ;;  %3829 = vst [vmem:[#allocation46_spill] sm:$0xff] %v2953_v4  ;;  %v1590_v9 = vadd.f32 %v1589_v60, %v2947_v53  ;;  %v1607_v12 = vadd.f32 %v1606_v48, %v2951_v21 }
 0x102   :  { %v2957_v56 = vpop.f32.mrf.mxu0  ;;  %v2959_v25 = vpop.f32.mrf.mxu1 }
 0x103   :  { %3830 = vst [vmem:[#allocation47_spill] sm:$0xff] %v2957_v56  ;;  %3831 = vst [vmem:[#allocation48_spill] sm:$0xff] %v2959_v25  ;;  %v1591_v20 = vadd.f32 %v1590_v9, %v2953_v4  ;;  %v1608_v17 = vadd.f32 %v1607_v12, %v2957_v56 }
 0x104   :  { %v2963_v28 = vpop.f32.mrf.mxu0  ;;  %v2965_v36 = vpop.f32.mrf.mxu1 }
 0x105   :  { %3832 = vst [vmem:[#allocation49_spill] sm:$0xff] %v2965_v36  ;;  %v1609_v32 = vadd.f32 %v1608_v17, %v2959_v25  ;;  %v1592_v33 = vadd.f32 %v1591_v20, %v2963_v28 }
 0x106   :  { %v2969_v24 = vpop.f32.mrf.mxu0  ;;  %v2971_v60 = vpop.f32.mrf.mxu1 }
 0x107   :  { %3833 = vst [vmem:[#allocation50_spill] sm:$0xff] %v2969_v24  ;;  %3834 = vst [vmem:[#allocation51_spill] sm:$0xff] %v2971_v60  ;;  %v1610_v48 = vadd.f32 %v1609_v32, %v2965_v36  ;;  %v1593_v21 = vadd.f32 %v1592_v33, %v2969_v24  ;;  %v2515_v24 = vmov 0  }
 0x108   :  { %v2975_v53 = vpop.f32.mrf.mxu0  ;;  %v2977_v9 = vpop.f32.mrf.mxu1  ;;  %2508 = vset.pattern.permute.xlu0 %v2515_v24  ;;  %2509 = vset.pattern.permute.xlu1 %v2515_v24 }
 0x109   :  { %3835 = vst [vmem:[#allocation52_spill] sm:$0xff] %v2975_v53  ;;  %v1611_v12 = vadd.f32 %v1610_v48, %v2975_v53  ;;  %v1594_v56 = vadd.f32 %v1593_v21, %v2971_v60  ;;  %v776_v21 = vld [vmem:[#allocation3] sm:$0xff]  ;;  %v777_v60 = vld [vmem:[#allocation3 + $0x8] sm:$0xff] }
 0x10a   :  { %v2981_v4 = vpop.f32.mrf.mxu0  ;;  %v2983_v17 = vpop.f32.mrf.mxu1 }
 0x10b   :  { %3836 = vst [vmem:[#allocation53_spill] sm:$0xff] %v2981_v4  ;;  %3837 = vst [vmem:[#allocation54_spill] sm:$0xff] %v2983_v17  ;;  %v1612_v20 = vadd.f32 %v1611_v12, %v2981_v4  ;;  %v1595_v25 = vadd.f32 %v1594_v56, %v2977_v9 }
 0x10c   :  { %v2988_v33 = vpop.f32.mrf.mxu1 }
 0x10d   :  { %1596 = vadd.xlane.f32.xlu1 %v1595_v25  ;;  %v1613_v32 = vadd.f32 %v1612_v20, %v2983_v17  ;;  %3838 = vst [vmem:[#allocation55_spill] sm:$0xff] %v2988_v33 }
 0x10f   :  { %v1614_v36 = vadd.f32 %v1613_v32, %v2988_v33 }
 0x111   :  { %1615 = vadd.xlane.f32.xlu1 %v1614_v36 }
 0x172   :  { %v796_v48 = vpop.xlane.xlu0 %795 }
 0x173   :  { %v816_v53 = vadd.f32 %v796_v48, %v776_v21 }
 0x175   :  { %818 = vst.msk [vmem:[#allocation3] sm:$0xff] %vm17_vm1, %v816_v53 }
 0x176   :  { %v815_v12 = vpop.xlane.xlu0 %814 }
 0x177   :  { %v817_v4 = vadd.f32 %v815_v12, %v777_v60 }
 0x179   :  { %819 = vst.msk [vmem:[#allocation3 + $0x8] sm:$0xff] %vm17_vm1, %v817_v4 }
 0x17c   :  { %v1577_v56 = vld [vmem:[#allocation3] sm:$0xff] }
 0x180   :  { %v1578_v36 = vld [vmem:[#allocation3 + $0x8] sm:$0xff] }
 0x196   :  { %v1597_v25 = vpop.xlane.xlu1 %1596 }
 0x197   :  { %v1617_v20 = vadd.f32 %v1597_v25, %v1577_v56 }
 0x199   :  { %1619 = vst.msk [vmem:[#allocation3] sm:$0xff] %vm17_vm1, %v1617_v20 }
 0x19a   :  { %v1616_v32 = vpop.xlane.xlu1 %1615 }
 0x19b   :  { %v1618_v33 = vadd.f32 %v1616_v32, %v1578_v36 }
 0x19d   :  { %1620 = vst.msk [vmem:[#allocation3 + $0x8] sm:$0xff] %vm17_vm1, %v1618_v33 }
 0x1a0   :  { %v1621_v24 = vld [vmem:[#allocation3] sm:$0xff] }
 0x1a1   :  { %v2995_v17 = vmul.f32 0.00021701389, %v1621_v24 }
 0x1a3   :  { %1665 = vperm.xlu0 %2508, %v2995_v17  }
 0x1a4   :  { %v1622_v53 = vld [vmem:[#allocation3 + $0x8] sm:$0xff] }
 0x1a5   :  { %v2998_v21 = vmul.f32 0.00021701389, %v1622_v53 }
 0x1a7   :  { %3839 = vst [vmem:[#allocation56_spill] sm:$0xff] %v2998_v21  ;;  %1670 = vperm.xlu1 %2509, %v2998_v21  }
 0x21e   :  { %v3001_v4 = vpop.permute.xlu0 %1665 }
 0x21f   :  { %v1673_v60 = vsub.f32 %v2775_v39, %v3001_v4  ;;  %v1674_v48 = vsub.f32 %v2777_v40, %v3001_v4  ;;  %v1675_v33 = vsub.f32 %v2779_v41, %v3001_v4  ;;  %v1676_v25 = vsub.f32 %v2785_v44, %v3001_v4 }
 0x220   :  { %v1677_v32 = vsub.f32 %v2795_v50, %v3001_v4  ;;  %v1678_v53 = vsub.f32 %v2801_v54, %v3001_v4 }
 0x221   :  { %v1711_v12 = vmul.f32 %v1673_v60, %v1673_v60  ;;  %v1712_v56 = vmul.f32 %v1674_v48, %v1674_v48  ;;  %v1713_v36 = vmul.f32 %v1675_v33, %v1675_v33  ;;  %v1714_v39 = vmul.f32 %v1676_v25, %v1676_v25 }
 0x222   :  { %v3011_v20 = vpop.permute.xlu1 %1670  ;;  %v1679_v48 = vsub.f32 %v2803_v55, %v3001_v4  ;;  %v1715_v44 = vmul.f32 %v1677_v32, %v1677_v32  ;;  %v1680_v33 = vsub.f32 %v2809_v59, %v3001_v4 }
 0x223   :  { %v1747_v24 = vadd.f32 %v1712_v56, %v1711_v12  ;;  %v1691_v41 = vsub.f32 %v2783_v43, %v3011_v20  ;;  %v1692_v60 = vsub.f32 %v2788_v46, %v3011_v20  ;;  %v1716_v12 = vmul.f32 %v1678_v53, %v1678_v53 }
 0x224   :  { %v1693_v25 = vsub.f32 %v2790_v47, %v3011_v20  ;;  %v1681_v43 = vsub.f32 %v2819_v2, %v3001_v4  ;;  %v1682_v46 = vsub.f32 %v2825_v6, %v3001_v4  ;;  %v1717_v54 = vmul.f32 %v1679_v48, %v1679_v48 }
 0x225   :  { %v1748_v40 = vadd.f32 %v1747_v24, %v1713_v36  ;;  %v1729_v36 = vmul.f32 %v1691_v41, %v1691_v41  ;;  %v1730_v24 = vmul.f32 %v1692_v60, %v1692_v60  ;;  %v1685_v41 = vsub.f32 %v2843_v18, %v3001_v4 }
 0x226   :  { %v1718_v32 = vmul.f32 %v1680_v33, %v1680_v33  ;;  %v1731_v60 = vmul.f32 %v1693_v25, %v1693_v25  ;;  %v1719_v47 = vmul.f32 %v1681_v43, %v1681_v43  ;;  %v1696_v18 = vsub.f32 %v2813_v62, %v3011_v20 }
 0x227   :  { %v1749_v21 = vadd.f32 %v1748_v40, %v1714_v39  ;;  %v1694_v39 = vsub.f32 %v2797_v51, %v3011_v20  ;;  %v1683_v40 = vsub.f32 %v2827_v7, %v3001_v4  ;;  %v1766_v48 = vadd.f32 %v1730_v24, %v1729_v36 }
 0x228   :  { %v1688_v51 = vsub.f32 %v2857_v27, %v3001_v4  ;;  %v1697_v33 = vsub.f32 %v2815_v63, %v3011_v20  ;;  %v1825_v27 = vsub.f32 %v2875_v42, %v3001_v4  ;;  %v1826_v43 = vsub.f32 %v2881_v52, %v3001_v4 }
 0x229   :  { %v1750_v56 = vadd.f32 %v1749_v21, %v1715_v44  ;;  %v1684_v44 = vsub.f32 %v2833_v11, %v3001_v4  ;;  %v1695_v21 = vsub.f32 %v2807_v58, %v3011_v20  ;;  %v1732_v7 = vmul.f32 %v1694_v39, %v1694_v39 }
 0x22a   :  { %v1767_v58 = vadd.f32 %v1766_v48, %v1731_v60  ;;  %v1690_v39 = vsub.f32 %v2873_v38, %v3001_v4  ;;  %v1723_v60 = vmul.f32 %v1685_v41, %v1685_v41  ;;  %v1734_v63 = vmul.f32 %v1696_v18, %v1696_v18 }
 0x22b   :  { %v1751_v55 = vadd.f32 %v1750_v56, %v1716_v12  ;;  %v1686_v12 = vsub.f32 %v2849_v22, %v3001_v4  ;;  %v1687_v56 = vsub.f32 %v2851_v23, %v3001_v4  ;;  %v1733_v25 = vmul.f32 %v1695_v21, %v1695_v21 }
 0x22c   :  { %v1768_v24 = vadd.f32 %v1767_v58, %v1732_v7  ;;  %v1699_v58 = vsub.f32 %v2831_v10, %v3011_v20  ;;  %v1735_v7 = vmul.f32 %v1697_v33, %v1697_v33  ;;  %v1863_v42 = vmul.f32 %v1825_v27, %v1825_v27 }
 0x22d   :  { %v1752_v53 = vadd.f32 %v1751_v55, %v1717_v54  ;;  %v1689_v54 = vsub.f32 %v2867_v34, %v3001_v4  ;;  %v1720_v55 = vmul.f32 %v1682_v46, %v1682_v46  ;;  %v1698_v46 = vsub.f32 %v2821_v3, %v3011_v20 }
 0x22e   :  { %v1769_v21 = vadd.f32 %v1768_v24, %v1733_v25  ;;  %v1726_v41 = vmul.f32 %v1688_v51, %v1688_v51  ;;  %v1828_v24 = vsub.f32 %v2896_v5, %v3001_v4  ;;  %v1728_v33 = vmul.f32 %v1690_v39, %v1690_v39 }
 0x22f   :  { %v1753_v11 = vadd.f32 %v1752_v53, %v1718_v32  ;;  %v1721_v32 = vmul.f32 %v1683_v40, %v1683_v40  ;;  %v1722_v53 = vmul.f32 %v1684_v44, %v1684_v44  ;;  %v1864_v40 = vmul.f32 %v1826_v43, %v1826_v43 }
 0x230   :  { %v1770_v52 = vadd.f32 %v1769_v21, %v1734_v63  ;;  %v1725_v44 = vmul.f32 %v1687_v56, %v1687_v56  ;;  %v1736_v25 = vmul.f32 %v1698_v46, %v1698_v46  ;;  %v1701_v10 = vsub.f32 %v2839_v15, %v3011_v20 }
 0x231   :  { %v1754_v36 = vadd.f32 %v1753_v11, %v1719_v47  ;;  %v1724_v47 = vmul.f32 %v1686_v12, %v1686_v12  ;;  %v1827_v11 = vsub.f32 %v2891_v0, %v3001_v4  ;;  %v1829_v63 = vsub.f32 %v2898_v8, %v3001_v4 }
 0x232   :  { %v1771_v12 = vadd.f32 %v1770_v52, %v1735_v7  ;;  %v1703_v52 = vsub.f32 %v2855_v26, %v3011_v20  ;;  %v1830_v39 = vsub.f32 %v2905_v16, %v3001_v4  ;;  %v1866_v46 = vmul.f32 %v1828_v24, %v1828_v24 }
 0x233   :  { %v1755_v48 = vadd.f32 %v1754_v36, %v1720_v55  ;;  %v1727_v55 = vmul.f32 %v1689_v54, %v1689_v54  ;;  %v1700_v36 = vsub.f32 %v2837_v14, %v3011_v20  ;;  %v1865_v56 = vmul.f32 %v1827_v11, %v1827_v11 }
 0x234   :  { %v1772_v51 = vadd.f32 %v1771_v12, %v1736_v25  ;;  %v1899_v54 = vadd.f32 %v1864_v40, %v1863_v42  ;;  %v1705_v42 = vsub.f32 %v2863_v31, %v3011_v20  ;;  %v1831_v7 = vsub.f32 %v2915_v29, %v3001_v4 }
 0x235   :  { %v1756_v62 = vadd.f32 %v1755_v48, %v1721_v32  ;;  %v1737_v32 = vmul.f32 %v1699_v58, %v1699_v58  ;;  %v1738_v43 = vmul.f32 %v1700_v36, %v1700_v36  ;;  %v1739_v58 = vmul.f32 %v1701_v10, %v1701_v10 }
 0x236   :  { %v1900_v21 = vadd.f32 %v1899_v54, %v1865_v56  ;;  %v1867_v36 = vmul.f32 %v1829_v63, %v1829_v63  ;;  %v1868_v12 = vmul.f32 %v1830_v39, %v1830_v39  ;;  %v1843_v24 = vsub.f32 %v2886_v57, %v3011_v20 }
 0x237   :  { %v1757_v18 = vadd.f32 %v1756_v62, %v1722_v53  ;;  %v1702_v62 = vsub.f32 %v2845_v19, %v3011_v20  ;;  %v1773_v48 = vadd.f32 %v1772_v51, %v1737_v32  ;;  %v1844_v10 = vsub.f32 %v2893_v1, %v3011_v20 }
 0x238   :  { %v1741_v56 = vmul.f32 %v1703_v52, %v1703_v52  ;;  %v1833_v54 = vsub.f32 %v2923_v45, %v3001_v4  ;;  %v1869_v39 = vmul.f32 %v1831_v7, %v1831_v7  ;;  %v1743_v7 = vmul.f32 %v1705_v42, %v1705_v42 }
 0x239   :  { %v1758_v27 = vadd.f32 %v1757_v18, %v1723_v60  ;;  %v1704_v60 = vsub.f32 %v2861_v30, %v3011_v20  ;;  %v1774_v40 = vadd.f32 %v1773_v48, %v1738_v43  ;;  %v1901_v18 = vadd.f32 %v1900_v21, %v1866_v46 }
 0x23a   :  { %v1740_v25 = vmul.f32 %v1702_v62, %v1702_v62  ;;  %v1845_v46 = vsub.f32 %v2903_v13, %v3011_v20  ;;  %v1881_v21 = vmul.f32 %v1843_v24, %v1843_v24  ;;  %v1882_v52 = vmul.f32 %v1844_v10, %v1844_v10  ;;  %v3842_v24 = vld [vmem:[#allocation35_spill] sm:$0xff] }
 0x23b   :  { %v1759_v53 = vadd.f32 %v1758_v27, %v1724_v47  ;;  %v1832_v47 = vsub.f32 %v2921_v37, %v3001_v4  ;;  %v1775_v27 = vadd.f32 %v1774_v40, %v1739_v58  ;;  %v1902_v51 = vadd.f32 %v1901_v18, %v1867_v36  ;;  %v3841_v18 = vld [vmem:[#allocation41_spill] sm:$0xff] }
 0x23c   :  { %v1742_v63 = vmul.f32 %v1704_v60, %v1704_v60  ;;  %v1707_v60 = vsub.f32 %v2879_v49, %v3011_v20  ;;  %v1918_v13 = vadd.f32 %v1882_v52, %v1881_v21 }
 0x23d   :  { %v1760_v11 = vadd.f32 %v1759_v53, %v1725_v44  ;;  %v1706_v44 = vsub.f32 %v2869_v35, %v3011_v20  ;;  %v1776_v43 = vadd.f32 %v1775_v27, %v1740_v25  ;;  %v1903_v53 = vadd.f32 %v1902_v51, %v1868_v12  ;;  %v3843_v51 = vld [vmem:[#allocation43_spill] sm:$0xff] }
 0x23e   :  { %v1870_v48 = vmul.f32 %v1832_v47, %v1832_v47  ;;  %v1835_v25 = vsub.f32 %v3841_v18, %v3001_v4  ;;  %v1871_v12 = vmul.f32 %v1833_v54, %v1833_v54  ;;  %v1836_v10 = vsub.f32 %v3843_v51, %v3001_v4 }
 0x23f   :  { %v1761_v32 = vadd.f32 %v1760_v11, %v1726_v41  ;;  %v1834_v41 = vsub.f32 %v2929_v61, %v3001_v4  ;;  %v1777_v11 = vadd.f32 %v1776_v43, %v1741_v56  ;;  %v1904_v40 = vadd.f32 %v1903_v53, %v1869_v39 }
 0x240   :  { %v1744_v27 = vmul.f32 %v1706_v44, %v1706_v44  ;;  %v1883_v53 = vmul.f32 %v1845_v46, %v1845_v46  ;;  %v1745_v1 = vmul.f32 %v1707_v60, %v1707_v60  ;;  %v3848_v46 = vld [vmem:[#allocation38_spill] sm:$0xff] }
 0x241   :  { %v1762_v62 = vadd.f32 %v1761_v32, %v1727_v55  ;;  %v3840_v55 = vld [vmem:[#allocation31_spill] sm:$0xff]  ;;  %v1778_v47 = vadd.f32 %v1777_v11, %v1742_v63  ;;  %v1905_v32 = vadd.f32 %v1904_v40, %v1870_v48  ;;  %v1872_v56 = vmul.f32 %v1834_v41, %v1834_v41  ;;  %v3845_v63 = vld [vmem:[#allocation44_spill] sm:$0xff] }
 0x242   :  { %v1708_v36 = vsub.f32 %v3840_v55, %v3011_v20  ;;  %v1837_v54 = vsub.f32 %v3845_v63, %v3001_v4  ;;  %v1873_v48 = vmul.f32 %v1835_v25, %v1835_v25  ;;  %v1919_v57 = vadd.f32 %v1918_v13, %v1883_v53  ;;  %v3847_v55 = vld [vmem:[#allocation46_spill] sm:$0xff] }
 0x243   :  { %v1763_v58 = vadd.f32 %v1762_v62, %v1728_v33  ;;  %v1846_v33 = vsub.f32 %v3842_v24, %v3011_v20  ;;  %v3844_v62 = vld [vmem:[#allocation36_spill] sm:$0xff]  ;;  %v1779_v39 = vadd.f32 %v1778_v47, %v1743_v7  ;;  %v1906_v42 = vadd.f32 %v1905_v32, %v1871_v12 }
 0x244   :  { %v1847_v43 = vsub.f32 %v3844_v62, %v3011_v20  ;;  %v1746_v41 = vmul.f32 %v1708_v36, %v1708_v36  ;;  %v1838_v62 = vsub.f32 %v3847_v55, %v3001_v4  ;;  %v1874_v7 = vmul.f32 %v1836_v10, %v1836_v10  ;;  %v3850_v10 = vld [vmem:[#allocation50_spill] sm:$0xff] }
 0x245   :  { %1764 = vadd.xlane.f32.xlu1 %v1763_v58  ;;  %v3846_v58 = vld [vmem:[#allocation37_spill] sm:$0xff]  ;;  %v1780_v44 = vadd.f32 %v1779_v39, %v1744_v27  ;;  %v1907_v40 = vadd.f32 %v1906_v42, %v1872_v56  ;;  %v1884_v24 = vmul.f32 %v1846_v33, %v1846_v33  ;;  %v1849_v21 = vsub.f32 %v3848_v46, %v3011_v20  ;;  %v3849_v27 = vld [vmem:[#allocation39_spill] sm:$0xff] }
 0x246   :  { %v1848_v11 = vsub.f32 %v3846_v58, %v3011_v20  ;;  %v1885_v47 = vmul.f32 %v1847_v43, %v1847_v43  ;;  %v1839_v25 = vsub.f32 %v2963_v28, %v3001_v4  ;;  %v1875_v32 = vmul.f32 %v1837_v54, %v1837_v54  ;;  %v3851_v43 = vld [vmem:[#allocation40_spill] sm:$0xff]  ;;  %v3852_v54 = vld [vmem:[#allocation51_spill] sm:$0xff] }
 0x247   :  { %v1781_v52 = vadd.f32 %v1780_v44, %v1745_v1  ;;  %v1908_v60 = vadd.f32 %v1907_v40, %v1873_v48  ;;  %v1920_v12 = vadd.f32 %v1919_v57, %v1884_v24  ;;  %v1850_v33 = vsub.f32 %v3849_v27, %v3011_v20 }
 0x248   :  { %v1886_v56 = vmul.f32 %v1848_v11, %v1848_v11  ;;  %v1840_v42 = vsub.f32 %v3850_v10, %v3001_v4  ;;  %v1876_v53 = vmul.f32 %v1838_v62, %v1838_v62  ;;  %v1851_v57 = vsub.f32 %v3851_v43, %v3011_v20 }
 0x249   :  { %v1782_v13 = vadd.f32 %v1781_v52, %v1746_v41  ;;  %v1909_v36 = vadd.f32 %v1908_v60, %v1874_v7  ;;  %v1921_v39 = vadd.f32 %v1920_v12, %v1885_v47  ;;  %v1887_v24 = vmul.f32 %v1849_v21, %v1849_v21  ;;  %v3853_v41 = vld [vmem:[#allocation42_spill] sm:$0xff]  ;;  %v3854_v12 = vld [vmem:[#allocation45_spill] sm:$0xff] }
 0x24a   :  { %v1841_v44 = vsub.f32 %v3852_v54, %v3001_v4  ;;  %v1877_v40 = vmul.f32 %v1839_v25, %v1839_v25  ;;  %v1852_v11 = vsub.f32 %v3853_v41, %v3011_v20  ;;  %v1888_v7 = vmul.f32 %v1850_v33, %v1850_v33  ;;  %v3855_v25 = vld [vmem:[#allocation47_spill] sm:$0xff] }
 0x24b   :  { %1783 = vadd.xlane.f32.xlu0 %v1782_v13  ;;  %v1910_v1 = vadd.f32 %v1909_v36, %v1875_v32  ;;  %v1922_v48 = vadd.f32 %v1921_v39, %v1886_v56  ;;  %v1842_v62 = vsub.f32 %v2977_v9, %v3001_v4  ;;  %v1878_v60 = vmul.f32 %v1840_v42, %v1840_v42 }
 0x24c   :  { %v1853_v32 = vsub.f32 %v3854_v12, %v3011_v20  ;;  %v1889_v21 = vmul.f32 %v1851_v57, %v1851_v57  ;;  %v1879_v36 = vmul.f32 %v1841_v44, %v1841_v44  ;;  %v1854_v39 = vsub.f32 %v3855_v25, %v3011_v20  ;;  %v3858_v44 = vld [vmem:[#allocation52_spill] sm:$0xff] }
 0x24d   :  { %v1911_v27 = vadd.f32 %v1910_v1, %v1876_v53  ;;  %v1923_v52 = vadd.f32 %v1922_v48, %v1887_v24  ;;  %v1890_v53 = vmul.f32 %v1852_v11, %v1852_v11  ;;  %v1880_v41 = vmul.f32 %v1842_v62, %v1842_v62  ;;  %v3856_v24 = vld [vmem:[#allocation48_spill] sm:$0xff]  ;;  %v3859_v62 = vld [vmem:[#allocation53_spill] sm:$0xff] }
 0x24e   :  { %v1855_v48 = vsub.f32 %v3856_v24, %v3011_v20  ;;  %v1891_v4 = vmul.f32 %v1853_v32, %v1853_v32  ;;  %v1892_v57 = vmul.f32 %v1854_v39, %v1854_v39  ;;  %v3860_v32 = vld [vmem:[#allocation54_spill] sm:$0xff] }
 0x24f   :  { %v1912_v47 = vadd.f32 %v1911_v27, %v1877_v40  ;;  %v1924_v13 = vadd.f32 %v1923_v52, %v1888_v7  ;;  %v3857_v40 = vld [vmem:[#allocation49_spill] sm:$0xff]  ;;  %v1857_v52 = vsub.f32 %v3858_v44, %v3011_v20 }
 0x250   :  { %v1856_v12 = vsub.f32 %v3857_v40, %v3011_v20 }
 0x251   :  { %v1913_v56 = vadd.f32 %v1912_v47, %v1878_v60  ;;  %v1925_v1 = vadd.f32 %v1924_v13, %v1889_v21  ;;  %v1893_v60 = vmul.f32 %v1855_v48, %v1855_v48  ;;  %v1858_v47 = vsub.f32 %v3859_v62, %v3011_v20 }
 0x252   :  { %v1894_v21 = vmul.f32 %v1856_v12, %v1856_v12 }
 0x253   :  { %v1914_v33 = vadd.f32 %v1913_v56, %v1879_v36  ;;  %v1926_v42 = vadd.f32 %v1925_v1, %v1890_v53  ;;  %v1859_v36 = vsub.f32 %v3860_v32, %v3011_v20  ;;  %v3861_v53 = vld [vmem:[#allocation55_spill] sm:$0xff]  ;;  %v1896_v1 = vmul.f32 %v1858_v47, %v1858_v47 }
 0x254   :  { %v1860_v39 = vsub.f32 %v3861_v53, %v3011_v20 }
 0x255   :  { %v1915_v27 = vadd.f32 %v1914_v33, %v1880_v41  ;;  %v1927_v7 = vadd.f32 %v1926_v42, %v1891_v4  ;;  %v1895_v41 = vmul.f32 %v1857_v52, %v1857_v52  ;;  %v1897_v4 = vmul.f32 %v1859_v36, %v1859_v36 }
 0x257   :  { %1916 = vadd.xlane.f32.xlu1 %v1915_v27  ;;  %v1928_v11 = vadd.f32 %v1927_v7, %v1892_v57  ;;  %v1898_v27 = vmul.f32 %v1860_v39, %v1860_v39  ;;  %v1709_v7 = vld [vmem:[#allocation4] sm:$0xff] }
 0x259   :  { %v1929_v13 = vadd.f32 %v1928_v11, %v1893_v60  ;;  %v1710_v60 = vld [vmem:[#allocation4 + $0x8] sm:$0xff] }
 0x25b   :  { %v1930_v56 = vadd.f32 %v1929_v13, %v1894_v21 }
 0x25d   :  { %v1931_v33 = vadd.f32 %v1930_v56, %v1895_v41 }
 0x25f   :  { %v1932_v42 = vadd.f32 %v1931_v33, %v1896_v1 }
 0x261   :  { %v1933_v48 = vadd.f32 %v1932_v42, %v1897_v4  ;;  %v1945_v4 = vld [vmem:[%s3711_s2] sm:$0xff] }
 0x263   :  { %v1934_v57 = vadd.f32 %v1933_v48, %v1898_v27 }
 0x265   :  { %1935 = vadd.xlane.f32.xlu1 %v1934_v57  ;;  %v1953_v57 = vld [vmem:[%s3712_s3] sm:$0xff] }
 0x2ce   :  { %v1765_v62 = vpop.xlane.xlu1 %1764 }
 0x2cf   :  { %v1785_v12 = vadd.f32 %v1765_v62, %v1709_v7 }
 0x2d1   :  { %1787 = vst.msk [vmem:[#allocation4] sm:$0xff] %vm17_vm1, %v1785_v12 }
 0x2d4   :  { %v1784_v11 = vpop.xlane.xlu0 %1783 }
 0x2d5   :  { %v1786_v52 = vadd.f32 %v1784_v11, %v1710_v60  ;;  %v1946_v60 = vld [vmem:[%s3711_s2 + $0x8] sm:$0xff] }
 0x2d7   :  { %1788 = vst.msk [vmem:[#allocation4 + $0x8] sm:$0xff] %vm17_vm1, %v1786_v52 }
 0x2d8   :  { %v1861_v21 = vld [vmem:[#allocation4] sm:$0xff] }
 0x2de   :  { %v1862_v41 = vld [vmem:[#allocation4 + $0x8] sm:$0xff] }
 0x2e0   :  { %v1917_v20 = vpop.xlane.xlu1 %1916 }
 0x2e1   :  { %v1937_v47 = vadd.f32 %v1917_v20, %v1861_v21  ;;  %v1954_v21 = vld [vmem:[%s3712_s3 + $0x8] sm:$0xff]  ;;  %v3862_v20 = vld [vmem:[#allocation56_spill] sm:$0xff] }
 0x2e3   :  { %1939 = vst.msk [vmem:[#allocation4] sm:$0xff] %vm17_vm1, %v1937_v47 }
 0x2ea   :  { %v1941_v13 = vld [vmem:[#allocation4] sm:$0xff] }
 0x2eb   :  { %v1943_v36 = vmul.f32 0.00021701389, %v1941_v13 }
 0x2ed   :  { %v1947_v56 = vadd.f32 1e-05, %v1943_v36 }
 0x2ee   :  { %v1936_v39 = vpop.xlane.xlu1 %1935 }
 0x2ef   :  { %v1938_v1 = vadd.f32 %v1936_v39, %v1862_v41  ;;  %2510 = vrsqrt.f32 %v1947_v56  ;;  %v3864_v56 = vld [vmem:[#allocation6_spill] sm:$0xff] }
 0x2f1   :  { %1940 = vst.msk [vmem:[#allocation4 + $0x8] sm:$0xff] %vm17_vm1, %v1938_v1  ;;  %v3865_v1 = vld [vmem:[#allocation7_spill] sm:$0xff] }
 0x2f8   :  { %v1942_v62 = vld [vmem:[#allocation4 + $0x8] sm:$0xff] }
 0x2f9   :  { %v1944_v33 = vmul.f32 0.00021701389, %v1942_v62 }
 0x2fb   :  { %v1948_v42 = vadd.f32 1e-05, %v1944_v33  ;;  %v3866_v33 = vld [vmem:[#allocation9_spill] sm:$0xff] }
 0x2fc   :  { %v2511_v27 = vpop.eup %2510 }
 0x2fd   :  { %v1951_v48 = vmul.f32 %v2511_v27, %v1945_v4  ;;  %2512 = vrsqrt.f32 %v1948_v42  ;;  %v3867_v27 = vld [vmem:[#allocation13_spill] sm:$0xff] }
 0x2ff   :  { %1997 = vperm.xlu1 %2509, %v1951_v48   ;;  %v1955_v7 = vmul.f32 %v1951_v48, %v2995_v17  ;;  %v3863_v17 = vld [vmem:[#allocation5_spill] sm:$0xff] }
 0x301   :  { %v1957_v12 = vsub.f32 %v1953_v57, %v1955_v7  ;;  %v3868_v57 = vld [vmem:[#allocation14_spill] sm:$0xff] }
 0x303   :  { %2043 = vperm.xlu1 %2509, %v1957_v12  }
 0x30a   :  { %v2513_v11 = vpop.eup %2512 }
 0x30b   :  { %v1952_v52 = vmul.f32 %v2513_v11, %v1946_v60 }
 0x30d   :  { %2002 = vperm.xlu0 %2508, %v1952_v52   ;;  %v1956_v47 = vmul.f32 %v1952_v52, %v3862_v20  ;;  %v3869_v52 = vld [vmem:[#allocation18_spill] sm:$0xff]  ;;  %v3870_v20 = vld [vmem:[#allocation20_spill] sm:$0xff] }
 0x30f   :  { %v1958_v13 = vsub.f32 %v1954_v21, %v1956_v47  ;;  %v3871_v47 = vld [vmem:[#allocation21_spill] sm:$0xff] }
 0x311   :  { %2048 = vperm.xlu1 %2509, %v1958_v13  }
 0x37a   :  { %v3167_v36 = vpop.permute.xlu1 %1997 }
 0x37b   :  { %v2005_v41 = vmul.f32 %v3167_v36, %v3863_v17  ;;  %v2006_v39 = vmul.f32 %v3167_v36, %v3864_v56  ;;  %v2007_v62 = vmul.f32 %v3167_v36, %v3865_v1  ;;  %v2008_v4 = vmul.f32 %v3167_v36, %v3866_v33  ;;  %v3872_v56 = vld [vmem:[#allocation24_spill] sm:$0xff] }
 0x37c   :  { %v2009_v42 = vmul.f32 %v3167_v36, %v2795_v50  ;;  %v2010_v48 = vmul.f32 %v3167_v36, %v3867_v27  ;;  %v2011_v7 = vmul.f32 %v3167_v36, %v3868_v57  ;;  %v2012_v12 = vmul.f32 %v3167_v36, %v2809_v59  ;;  %v3873_v33 = vld [vmem:[#allocation28_spill] sm:$0xff]  ;;  %v3874_v57 = vld [vmem:[#allocation30_spill] sm:$0xff] }
 0x37d   :  { %v2013_v60 = vmul.f32 %v3167_v36, %v2819_v2  ;;  %v2014_v11 = vmul.f32 %v3167_v36, %v2825_v6  ;;  %v2015_v21 = vmul.f32 %v3167_v36, %v3869_v52  ;;  %v2016_v50 = vmul.f32 %v3167_v36, %v3870_v20 }
 0x37e   :  { %v2017_v13 = vmul.f32 %v3167_v36, %v3871_v47  ;;  %v2018_v17 = vmul.f32 %v3167_v36, %v2849_v22  ;;  %v2019_v59 = vmul.f32 %v3167_v36, %v2851_v23  ;;  %v2020_v2 = vmul.f32 %v3167_v36, %v3872_v56  ;;  %v3237_v47 = vpop.permute.xlu1 %2043 }
 0x37f   :  { %v2021_v6 = vmul.f32 %v3167_v36, %v2867_v34  ;;  %v2022_v1 = vmul.f32 %v3167_v36, %v2873_v38  ;;  %v3207_v27 = vmul.f32 %v3167_v36, %v3873_v33  ;;  %v3211_v52 = vmul.f32 %v3167_v36, %v3874_v57 }
 0x380   :  { %v3215_v22 = vmul.f32 %v3167_v36, %v2891_v0  ;;  %v3219_v23 = vmul.f32 %v3167_v36, %v2896_v5  ;;  %v3223_v34 = vmul.f32 %v3167_v36, %v2898_v8  ;;  %v3227_v38 = vmul.f32 %v3167_v36, %v2905_v16 }
 0x381   :  { %v3231_v20 = vmul.f32 %v3167_v36, %v2915_v29  ;;  %v3235_v0 = vmul.f32 %v3167_v36, %v2921_v37  ;;  %v3241_v5 = vmul.f32 %v3167_v36, %v2923_v45  ;;  %v3245_v8 = vmul.f32 %v3167_v36, %v2929_v61 }
 0x382   :  { %v3249_v16 = vmul.f32 %v3167_v36, %v3841_v18  ;;  %v3253_v29 = vmul.f32 %v3167_v36, %v3843_v51  ;;  %v3257_v37 = vmul.f32 %v3167_v36, %v3845_v63  ;;  %v3261_v45 = vmul.f32 %v3167_v36, %v3847_v55 }
 0x383   :  { %v3265_v61 = vmul.f32 %v3167_v36, %v2963_v28  ;;  %v3269_v18 = vmul.f32 %v3167_v36, %v3850_v10  ;;  %v3273_v51 = vmul.f32 %v3167_v36, %v3852_v54  ;;  %v2051_v56 = vadd.f32 %v3237_v47, %v2005_v41 }
 0x384   :  { %v2052_v63 = vadd.f32 %v3237_v47, %v2006_v39  ;;  %v2053_v33 = vadd.f32 %v3237_v47, %v2007_v62  ;;  %v2054_v55 = vadd.f32 %v3237_v47, %v2008_v4  ;;  %v2055_v57 = vadd.f32 %v3237_v47, %v2009_v42 }
 0x385   :  { %v2056_v28 = vadd.f32 %v3237_v47, %v2010_v48  ;;  %v2057_v53 = vadd.f32 %v3237_v47, %v2011_v7  ;;  %v2058_v10 = vadd.f32 %v3237_v47, %v2012_v12  ;;  %v2059_v32 = vadd.f32 %v3237_v47, %v2013_v60 }
 0x386   :  { %v2060_v54 = vadd.f32 %v3237_v47, %v2014_v11  ;;  %v2061_v41 = vadd.f32 %v3237_v47, %v2015_v21  ;;  %v2062_v39 = vadd.f32 %v3237_v47, %v2016_v50  ;;  %v2063_v62 = vadd.f32 %v3237_v47, %v2017_v13 }
 0x387   :  { %v2064_v4 = vadd.f32 %v3237_v47, %v2018_v17  ;;  %v2065_v42 = vadd.f32 %v3237_v47, %v2019_v59  ;;  %v2066_v48 = vadd.f32 %v3237_v47, %v2020_v2  ;;  %v2067_v7 = vadd.f32 %v3237_v47, %v2021_v6 }
 0x388   :  { %v2087_v44 = vmul.f32 0.01, %v2051_v56  ;;  %v2088_v12 = vmul.f32 0.01, %v2052_v63  ;;  %v2068_v60 = vadd.f32 %v3237_v47, %v2022_v1  ;;  %v2089_v40 = vmul.f32 0.01, %v2053_v33 }
 0x389   :  { %v2090_v11 = vmul.f32 0.01, %v2054_v55  ;;  %v2091_v24 = vmul.f32 0.01, %v2055_v57  ;;  %v2092_v21 = vmul.f32 0.01, %v2056_v28 }
 0x38a   :  { %v2093_v25 = vmul.f32 0.01, %v2057_v53  ;;  %v2094_v50 = vmul.f32 0.01, %v2058_v10  ;;  %v2123_v43 = vmax.f32 %v2051_v56, %v2087_v44  ;;  %v2095_v13 = vmul.f32 0.01, %v2059_v32 }
 0x38b   :  { %v2096_v46 = vmul.f32 0.01, %v2060_v54  ;;  %v2097_v17 = vmul.f32 0.01, %v2061_v41  ;;  %v2124_v58 = vmax.f32 %v2052_v63, %v2088_v12  ;;  %v2098_v59 = vmul.f32 0.01, %v2062_v39 }
 0x38c   :  { %v2099_v49 = vmul.f32 0.01, %v2063_v62  ;;  %v2100_v2 = vmul.f32 0.01, %v2064_v4  ;;  %v2125_v35 = vmax.f32 %v2053_v33, %v2089_v40  ;;  %2159 = vst [vmem:[%s3713_s4] sm:$0xff] %v2123_v43  ;;  %v2101_v6 = vmul.f32 0.01, %v2065_v42 }
 0x38d   :  { %v2102_v1 = vmul.f32 0.01, %v2066_v48  ;;  %v2103_v31 = vmul.f32 0.01, %v2067_v7  ;;  %v2126_v30 = vmax.f32 %v2054_v55, %v2090_v11  ;;  %2160 = vst [vmem:[%s3713_s4 + $0x8] sm:$0xff] %v2124_v58  ;;  %v2127_v56 = vmax.f32 %v2055_v57, %v2091_v24 }
 0x38e   :  { %v2104_v44 = vmul.f32 0.01, %v2068_v60  ;;  %v2128_v26 = vmax.f32 %v2056_v28, %v2092_v21  ;;  %v2129_v63 = vmax.f32 %v2057_v53, %v2093_v25  ;;  %2161 = vst [vmem:[%s3713_s4 + $0x10] sm:$0xff] %v2125_v35  ;;  %v2130_v40 = vmax.f32 %v2058_v10, %v2094_v50 }
 0x38f   :  { %v2131_v33 = vmax.f32 %v2059_v32, %v2095_v13  ;;  %v2132_v12 = vmax.f32 %v2060_v54, %v2096_v46  ;;  %v2133_v43 = vmax.f32 %v2061_v41, %v2097_v17  ;;  %2162 = vst [vmem:[%s3713_s4 + $0x18] sm:$0xff] %v2126_v30  ;;  %v2134_v55 = vmax.f32 %v2062_v39, %v2098_v59 }
 0x390   :  { %v2135_v11 = vmax.f32 %v2063_v62, %v2099_v49  ;;  %v2136_v19 = vmax.f32 %v2064_v4, %v2100_v2  ;;  %v2137_v58 = vmax.f32 %v2065_v42, %v2101_v6  ;;  %2163 = vst [vmem:[%s3713_s4 + $0x20] sm:$0xff] %v2127_v56  ;;  %2164 = vst [vmem:[%s3713_s4 + $0x28] sm:$0xff] %v2128_v26  ;;  %v3393_v2 = vpop.permute.xlu0 %2002 }
 0x391   :  { %2165 = vst [vmem:[%s3713_s4 + $0x30] sm:$0xff] %v2129_v63  ;;  %v2248_v35 = vmul.f32 %v3167_v36, %v2977_v9  ;;  %v2138_v30 = vmax.f32 %v2066_v48, %v2102_v1  ;;  %v2139_v46 = vmax.f32 %v2067_v7, %v2103_v31  ;;  %v2140_v49 = vmax.f32 %v2068_v60, %v2104_v44 }
 0x392   :  { %2166 = vst [vmem:[%s3713_s4 + $0x38] sm:$0xff] %v2130_v40  ;;  %2167 = vst [vmem:[%s3713_s4 + $0x40] sm:$0xff] %v2131_v33  ;;  %v2267_v26 = vadd.f32 %v3207_v27, %v3237_v47  ;;  %v2268_v31 = vadd.f32 %v3211_v52, %v3237_v47  ;;  %v2269_v9 = vadd.f32 %v3215_v22, %v3237_v47 }
 0x393   :  { %2168 = vst [vmem:[%s3713_s4 + $0x48] sm:$0xff] %v2132_v12  ;;  %2169 = vst [vmem:[%s3713_s4 + $0x50] sm:$0xff] %v2133_v43  ;;  %v2270_v25 = vadd.f32 %v3219_v23, %v3237_v47  ;;  %v2272_v24 = vadd.f32 %v3227_v38, %v3237_v47  ;;  %v2273_v32 = vadd.f32 %v3231_v20, %v3237_v47 }
 0x394   :  { %2170 = vst [vmem:[%s3713_s4 + $0x58] sm:$0xff] %v2134_v55  ;;  %2171 = vst [vmem:[%s3713_s4 + $0x60] sm:$0xff] %v2135_v11  ;;  %v2274_v53 = vadd.f32 %v3235_v0, %v3237_v47  ;;  %v2275_v36 = vadd.f32 %v3241_v5, %v3237_v47  ;;  %v2276_v27 = vadd.f32 %v3245_v8, %v3237_v47  ;;  %v2303_v5 = vmul.f32 0.01, %v2267_v26  ;;  %v3875_v11 = vld [vmem:[#allocation8_spill] sm:$0xff] }
 0x395   :  { %2172 = vst [vmem:[%s3713_s4 + $0x68] sm:$0xff] %v2136_v19  ;;  %2173 = vst [vmem:[%s3713_s4 + $0x70] sm:$0xff] %v2137_v58  ;;  %v2271_v19 = vadd.f32 %v3223_v34, %v3237_v47  ;;  %v2277_v52 = vadd.f32 %v3249_v16, %v3237_v47  ;;  %v2278_v22 = vadd.f32 %v3253_v29, %v3237_v47  ;;  %v2304_v8 = vmul.f32 0.01, %v2268_v31 }
 0x396   :  { %2174 = vst [vmem:[%s3713_s4 + $0x78] sm:$0xff] %v2138_v30  ;;  %2175 = vst [vmem:[%s3713_s4 + $0x80] sm:$0xff] %v2139_v46  ;;  %v2279_v23 = vadd.f32 %v3257_v37, %v3237_v47  ;;  %v2280_v34 = vadd.f32 %v3261_v45, %v3237_v47  ;;  %v2281_v38 = vadd.f32 %v3265_v61, %v3237_v47  ;;  %v2305_v16 = vmul.f32 0.01, %v2269_v9  ;;  %v3877_v46 = vld [vmem:[#allocation11_spill] sm:$0xff] }
 0x397   :  { %2176 = vst [vmem:[%s3713_s4 + $0x88] sm:$0xff] %v2140_v49  ;;  %v2282_v20 = vadd.f32 %v3269_v18, %v3237_v47  ;;  %v2283_v0 = vadd.f32 %v3273_v51, %v3237_v47  ;;  %v2284_v29 = vadd.f32 %v2248_v35, %v3237_v47  ;;  %v2306_v57 = vmul.f32 0.01, %v2270_v25  ;;  %v3876_v35 = vld [vmem:[#allocation10_spill] sm:$0xff] }
 0x398   :  { %v2307_v28 = vmul.f32 0.01, %v2271_v19  ;;  %v2308_v37 = vmul.f32 0.01, %v2272_v24  ;;  %v2309_v10 = vmul.f32 0.01, %v2273_v32  ;;  %v2339_v41 = vmax.f32 %v2267_v26, %v2303_v5 }
 0x399   :  { %v2310_v54 = vmul.f32 0.01, %v2274_v53  ;;  %v2311_v45 = vmul.f32 0.01, %v2275_v36  ;;  %v2312_v39 = vmul.f32 0.01, %v2276_v27  ;;  %v2340_v4 = vmax.f32 %v2268_v31, %v2304_v8 }
 0x39a   :  { %v2313_v61 = vmul.f32 0.01, %v2277_v52  ;;  %v2314_v62 = vmul.f32 0.01, %v2278_v22  ;;  %v2315_v18 = vmul.f32 0.01, %v2279_v23  ;;  %v2341_v51 = vmax.f32 %v2269_v9, %v2305_v16 }
 0x39b   :  { %v2316_v42 = vmul.f32 0.01, %v2280_v34  ;;  %v2317_v48 = vmul.f32 0.01, %v2281_v38  ;;  %2470 = vst [vmem:[%s3713_s4 + $0x120] sm:$0xff] %v2339_v41  ;;  %v2342_v21 = vmax.f32 %v2270_v25, %v2306_v57  ;;  %2471 = vst [vmem:[%s3713_s4 + $0x128] sm:$0xff] %v2340_v4  ;;  %v2343_v50 = vmax.f32 %v2271_v19, %v2307_v28 }
 0x39c   :  { %v2318_v47 = vmul.f32 0.01, %v2282_v20  ;;  %v2319_v7 = vmul.f32 0.01, %v2283_v0  ;;  %v2320_v60 = vmul.f32 0.01, %v2284_v29  ;;  %v2344_v13 = vmax.f32 %v2272_v24, %v2308_v37 }
 0x39d   :  { %v2345_v17 = vmax.f32 %v2273_v32, %v2309_v10  ;;  %v2346_v59 = vmax.f32 %v2274_v53, %v2310_v54  ;;  %2472 = vst [vmem:[%s3713_s4 + $0x130] sm:$0xff] %v2341_v51  ;;  %v2347_v6 = vmax.f32 %v2275_v36, %v2311_v45  ;;  %v2348_v1 = vmax.f32 %v2276_v27, %v2312_v39  ;;  %v3878_v26 = vld [vmem:[#allocation12_spill] sm:$0xff]  ;;  %v3879_v9 = vld [vmem:[#allocation15_spill] sm:$0xff]  ;;  %v3881_v32 = vld [vmem:[#allocation17_spill] sm:$0xff] }
 0x39e   :  { %v2349_v44 = vmax.f32 %v2277_v52, %v2313_v61  ;;  %v2350_v56 = vmax.f32 %v2278_v22, %v2314_v62  ;;  %2473 = vst [vmem:[%s3713_s4 + $0x138] sm:$0xff] %v2342_v21  ;;  %v2351_v63 = vmax.f32 %v2279_v23, %v2315_v18  ;;  %v2352_v40 = vmax.f32 %v2280_v34, %v2316_v42  ;;  %v3880_v19 = vld [vmem:[#allocation16_spill] sm:$0xff]  ;;  %v3882_v27 = vld [vmem:[#allocation19_spill] sm:$0xff]  ;;  %v3883_v34 = vld [vmem:[#allocation22_spill] sm:$0xff] }
 0x39f   :  { %v2353_v33 = vmax.f32 %v2281_v38, %v2317_v48  ;;  %v2354_v12 = vmax.f32 %v2282_v20, %v2318_v47  ;;  %2474 = vst [vmem:[%s3713_s4 + $0x140] sm:$0xff] %v2343_v50  ;;  %2475 = vst [vmem:[%s3713_s4 + $0x148] sm:$0xff] %v2344_v13  ;;  %v2355_v43 = vmax.f32 %v2283_v0, %v2319_v7  ;;  %v3884_v20 = vld [vmem:[#allocation23_spill] sm:$0xff]  ;;  %v3885_v5 = vld [vmem:[#allocation25_spill] sm:$0xff]  ;;  %v3508_v50 = vpop.permute.xlu1 %2048 }
 0x3a0   :  { %2476 = vst [vmem:[%s3713_s4 + $0x150] sm:$0xff] %v2345_v17  ;;  %2477 = vst [vmem:[%s3713_s4 + $0x158] sm:$0xff] %v2346_v59  ;;  %v2356_v55 = vmax.f32 %v2284_v29, %v2320_v60  ;;  %v2023_v58 = vmul.f32 %v3393_v2, %v3875_v11  ;;  %v2024_v30 = vmul.f32 %v3393_v2, %v3876_v35  ;;  %v3886_v16 = vld [vmem:[#allocation26_spill] sm:$0xff]  ;;  %v3887_v29 = vld [vmem:[#allocation27_spill] sm:$0xff] }
 0x3a1   :  { %2478 = vst [vmem:[%s3713_s4 + $0x160] sm:$0xff] %v2347_v6  ;;  %2479 = vst [vmem:[%s3713_s4 + $0x168] sm:$0xff] %v2348_v1  ;;  %v2025_v49 = vmul.f32 %v3393_v2, %v3877_v46  ;;  %v2026_v31 = vmul.f32 %v3393_v2, %v3878_v26  ;;  %v2027_v25 = vmul.f32 %v3393_v2, %v3879_v9  ;;  %v3888_v28 = vld [vmem:[#allocation29_spill] sm:$0xff]  ;;  %v3889_v37 = vld [vmem:[#allocation31_spill] sm:$0xff] }
 0x3a2   :  { %2480 = vst [vmem:[%s3713_s4 + $0x170] sm:$0xff] %v2349_v44  ;;  %2481 = vst [vmem:[%s3713_s4 + $0x178] sm:$0xff] %v2350_v56  ;;  %v2028_v24 = vmul.f32 %v3393_v2, %v3880_v19  ;;  %v2029_v53 = vmul.f32 %v3393_v2, %v3881_v32  ;;  %v2030_v36 = vmul.f32 %v3393_v2, %v2821_v3  ;;  %v3890_v10 = vld [vmem:[#allocation32_spill] sm:$0xff]  ;;  %v3891_v45 = vld [vmem:[#allocation33_spill] sm:$0xff] }
 0x3a3   :  { %2482 = vst [vmem:[%s3713_s4 + $0x180] sm:$0xff] %v2351_v63  ;;  %2483 = vst [vmem:[%s3713_s4 + $0x188] sm:$0xff] %v2352_v40  ;;  %v2031_v52 = vmul.f32 %v3393_v2, %v3882_v27  ;;  %v2032_v22 = vmul.f32 %v3393_v2, %v2837_v14  ;;  %v2033_v23 = vmul.f32 %v3393_v2, %v2839_v15  ;;  %v3892_v39 = vld [vmem:[#allocation34_spill] sm:$0xff]  ;;  %v3893_v62 = vld [vmem:[#allocation35_spill] sm:$0xff] }
 0x3a4   :  { %2484 = vst [vmem:[%s3713_s4 + $0x190] sm:$0xff] %v2353_v33  ;;  %2485 = vst [vmem:[%s3713_s4 + $0x198] sm:$0xff] %v2354_v12  ;;  %v2034_v38 = vmul.f32 %v3393_v2, %v3883_v34  ;;  %v2035_v0 = vmul.f32 %v3393_v2, %v3884_v20  ;;  %v2036_v8 = vmul.f32 %v3393_v2, %v3885_v5  ;;  %v3894_v18 = vld [vmem:[#allocation36_spill] sm:$0xff]  ;;  %v3895_v48 = vld [vmem:[#allocation37_spill] sm:$0xff] }
 0x3a5   :  { %2486 = vst [vmem:[%s3713_s4 + $0x1a0] sm:$0xff] %v2355_v43  ;;  %2487 = vst [vmem:[%s3713_s4 + $0x1a8] sm:$0xff] %v2356_v55  ;;  %v2037_v3 = vmul.f32 %v3393_v2, %v3886_v16  ;;  %v2038_v57 = vmul.f32 %v3393_v2, %v3887_v29  ;;  %v2039_v14 = vmul.f32 %v3393_v2, %v3888_v28  ;;  %v3896_v47 = vld [vmem:[#allocation38_spill] sm:$0xff]  ;;  %v3897_v60 = vld [vmem:[#allocation39_spill] sm:$0xff] }
 0x3a6   :  { %v2040_v15 = vmul.f32 %v3393_v2, %v3889_v37  ;;  %v3478_v54 = vmul.f32 %v3393_v2, %v3890_v10  ;;  %v3482_v41 = vmul.f32 %v3393_v2, %v3891_v45  ;;  %v3486_v61 = vmul.f32 %v3393_v2, %v3892_v39  ;;  %v3898_v13 = vld [vmem:[#allocation40_spill] sm:$0xff]  ;;  %v3899_v59 = vld [vmem:[#allocation42_spill] sm:$0xff]  ;;  %v3900_v1 = vld [vmem:[#allocation45_spill] sm:$0xff] }
 0x3a7   :  { %v3490_v4 = vmul.f32 %v3393_v2, %v3893_v62  ;;  %v3494_v42 = vmul.f32 %v3393_v2, %v3894_v18  ;;  %v3498_v51 = vmul.f32 %v3393_v2, %v3895_v48  ;;  %v3502_v7 = vmul.f32 %v3393_v2, %v3896_v47  ;;  %v3901_v56 = vld [vmem:[#allocation47_spill] sm:$0xff]  ;;  %v3902_v40 = vld [vmem:[#allocation48_spill] sm:$0xff]  ;;  %v3903_v12 = vld [vmem:[#allocation49_spill] sm:$0xff] }
 0x3a8   :  { %v3506_v21 = vmul.f32 %v3393_v2, %v3897_v60  ;;  %v3512_v17 = vmul.f32 %v3393_v2, %v3898_v13  ;;  %v3516_v6 = vmul.f32 %v3393_v2, %v3899_v59  ;;  %v3520_v44 = vmul.f32 %v3393_v2, %v3900_v1  ;;  %v3904_v55 = vld [vmem:[#allocation52_spill] sm:$0xff]  ;;  %v3905_v35 = vld [vmem:[#allocation53_spill] sm:$0xff]  ;;  %v3906_v26 = vld [vmem:[#allocation54_spill] sm:$0xff] }
 0x3a9   :  { %v3524_v63 = vmul.f32 %v3393_v2, %v3901_v56  ;;  %v3528_v33 = vmul.f32 %v3393_v2, %v3902_v40  ;;  %v3532_v43 = vmul.f32 %v3393_v2, %v3903_v12  ;;  %v3536_v11 = vmul.f32 %v3393_v2, %v3904_v55 }
 0x3aa   :  { %v3540_v46 = vmul.f32 %v3393_v2, %v3905_v35  ;;  %v3544_v9 = vmul.f32 %v3393_v2, %v3906_v26  ;;  %v2069_v19 = vadd.f32 %v3508_v50, %v2023_v58  ;;  %v2070_v32 = vadd.f32 %v3508_v50, %v2024_v30 }
 0x3ab   :  { %v2071_v27 = vadd.f32 %v3508_v50, %v2025_v49  ;;  %v2072_v34 = vadd.f32 %v3508_v50, %v2026_v31  ;;  %v2073_v20 = vadd.f32 %v3508_v50, %v2027_v25  ;;  %v2074_v5 = vadd.f32 %v3508_v50, %v2028_v24 }
 0x3ac   :  { %v2075_v16 = vadd.f32 %v3508_v50, %v2029_v53  ;;  %v2076_v29 = vadd.f32 %v3508_v50, %v2030_v36  ;;  %v2077_v28 = vadd.f32 %v3508_v50, %v2031_v52  ;;  %v2078_v37 = vadd.f32 %v3508_v50, %v2032_v22 }
 0x3ad   :  { %v2079_v58 = vadd.f32 %v3508_v50, %v2033_v23  ;;  %v2080_v30 = vadd.f32 %v3508_v50, %v2034_v38  ;;  %v2081_v49 = vadd.f32 %v3508_v50, %v2035_v0  ;;  %v2082_v31 = vadd.f32 %v3508_v50, %v2036_v8 }
 0x3ae   :  { %v2083_v25 = vadd.f32 %v3508_v50, %v2037_v3  ;;  %v2084_v24 = vadd.f32 %v3508_v50, %v2038_v57  ;;  %v2085_v53 = vadd.f32 %v3508_v50, %v2039_v14  ;;  %v2105_v10 = vmul.f32 0.01, %v2069_v19 }
 0x3af   :  { %v2106_v36 = vmul.f32 0.01, %v2070_v32  ;;  %v2086_v52 = vadd.f32 %v3508_v50, %v2040_v15  ;;  %v2107_v45 = vmul.f32 0.01, %v2071_v27  ;;  %v2108_v22 = vmul.f32 0.01, %v2072_v34 }
 0x3b0   :  { %v2109_v39 = vmul.f32 0.01, %v2073_v20  ;;  %v2110_v23 = vmul.f32 0.01, %v2074_v5  ;;  %v2111_v62 = vmul.f32 0.01, %v2075_v16  ;;  %v2141_v18 = vmax.f32 %v2069_v19, %v2105_v10 }
 0x3b1   :  { %v2112_v38 = vmul.f32 0.01, %v2076_v29  ;;  %v2113_v0 = vmul.f32 0.01, %v2077_v28  ;;  %v2114_v48 = vmul.f32 0.01, %v2078_v37  ;;  %v2142_v47 = vmax.f32 %v2070_v32, %v2106_v36 }
 0x3b2   :  { %v2115_v8 = vmul.f32 0.01, %v2079_v58  ;;  %v2116_v3 = vmul.f32 0.01, %v2080_v30  ;;  %v2117_v60 = vmul.f32 0.01, %v2081_v49  ;;  %v2143_v13 = vmax.f32 %v2071_v27, %v2107_v45 }
 0x3b3   :  { %v2118_v57 = vmul.f32 0.01, %v2082_v31  ;;  %2177 = vst [vmem:[%s3713_s4 + $0x90] sm:$0xff] %v2141_v18  ;;  %v2119_v14 = vmul.f32 0.01, %v2083_v25  ;;  %v2144_v1 = vmax.f32 %v2072_v34, %v2108_v22  ;;  %2178 = vst [vmem:[%s3713_s4 + $0x98] sm:$0xff] %v2142_v47  ;;  %v2145_v40 = vmax.f32 %v2073_v20, %v2109_v39 }
 0x3b4   :  { %v2120_v15 = vmul.f32 0.01, %v2084_v24  ;;  %v2121_v59 = vmul.f32 0.01, %v2085_v53  ;;  %v2122_v56 = vmul.f32 0.01, %v2086_v52  ;;  %v2146_v12 = vmax.f32 %v2074_v5, %v2110_v23 }
 0x3b5   :  { %v2147_v55 = vmax.f32 %v2075_v16, %v2111_v62  ;;  %2179 = vst [vmem:[%s3713_s4 + $0xa0] sm:$0xff] %v2143_v13  ;;  %v2148_v35 = vmax.f32 %v2076_v29, %v2112_v38  ;;  %v2149_v26 = vmax.f32 %v2077_v28, %v2113_v0  ;;  %v2150_v19 = vmax.f32 %v2078_v37, %v2114_v48  ;;  %v3907_v20 = vld [vmem:[#allocation55_spill] sm:$0xff] }
 0x3b6   :  { %v2151_v32 = vmax.f32 %v2079_v58, %v2115_v8  ;;  %2180 = vst [vmem:[%s3713_s4 + $0xa8] sm:$0xff] %v2144_v1  ;;  %v2152_v27 = vmax.f32 %v2080_v30, %v2116_v3  ;;  %v2153_v34 = vmax.f32 %v2081_v49, %v2117_v60  ;;  %v2154_v10 = vmax.f32 %v2082_v31, %v2118_v57 }
 0x3b7   :  { %v2155_v36 = vmax.f32 %v2083_v25, %v2119_v14  ;;  %2181 = vst [vmem:[%s3713_s4 + $0xb0] sm:$0xff] %v2145_v40  ;;  %2182 = vst [vmem:[%s3713_s4 + $0xb8] sm:$0xff] %v2146_v12  ;;  %v2266_v5 = vmul.f32 %v3393_v2, %v3907_v20  ;;  %v2156_v16 = vmax.f32 %v2084_v24, %v2120_v15 }
 0x3b8   :  { %2183 = vst [vmem:[%s3713_s4 + $0xc0] sm:$0xff] %v2147_v55  ;;  %v2157_v29 = vmax.f32 %v2085_v53, %v2121_v59  ;;  %v2158_v28 = vmax.f32 %v2086_v52, %v2122_v56  ;;  %2184 = vst [vmem:[%s3713_s4 + $0xc8] sm:$0xff] %v2148_v35  ;;  %v2285_v2 = vadd.f32 %v3478_v54, %v3508_v50 }
 0x3b9   :  { %2185 = vst [vmem:[%s3713_s4 + $0xd0] sm:$0xff] %v2149_v26  ;;  %2186 = vst [vmem:[%s3713_s4 + $0xd8] sm:$0xff] %v2150_v19  ;;  %v2286_v37 = vadd.f32 %v3482_v41, %v3508_v50  ;;  %v2287_v58 = vadd.f32 %v3486_v61, %v3508_v50  ;;  %v2288_v30 = vadd.f32 %v3490_v4, %v3508_v50 }
 0x3ba   :  { %2187 = vst [vmem:[%s3713_s4 + $0xe0] sm:$0xff] %v2151_v32  ;;  %2188 = vst [vmem:[%s3713_s4 + $0xe8] sm:$0xff] %v2152_v27  ;;  %v2289_v54 = vadd.f32 %v3494_v42, %v3508_v50  ;;  %v2290_v41 = vadd.f32 %v3498_v51, %v3508_v50  ;;  %v2291_v61 = vadd.f32 %v3502_v7, %v3508_v50  ;;  %v2321_v24 = vmul.f32 0.01, %v2285_v2 }
 0x3bb   :  { %2189 = vst [vmem:[%s3713_s4 + $0xf0] sm:$0xff] %v2153_v34  ;;  %2190 = vst [vmem:[%s3713_s4 + $0xf8] sm:$0xff] %v2154_v10  ;;  %v2292_v4 = vadd.f32 %v3506_v21, %v3508_v50  ;;  %v2293_v49 = vadd.f32 %v3512_v17, %v3508_v50  ;;  %v2294_v31 = vadd.f32 %v3516_v6, %v3508_v50  ;;  %v2323_v53 = vmul.f32 0.01, %v2287_v58 }
 0x3bc   :  { %2191 = vst [vmem:[%s3713_s4 + $0x100] sm:$0xff] %v2155_v36  ;;  %2192 = vst [vmem:[%s3713_s4 + $0x108] sm:$0xff] %v2156_v16  ;;  %v2295_v25 = vadd.f32 %v3520_v44, %v3508_v50  ;;  %v2296_v42 = vadd.f32 %v3524_v63, %v3508_v50  ;;  %v2297_v51 = vadd.f32 %v3528_v33, %v3508_v50  ;;  %v2322_v44 = vmul.f32 0.01, %v2286_v37 }
 0x3bd   :  { %2193 = vst [vmem:[%s3713_s4 + $0x110] sm:$0xff] %v2157_v29  ;;  %2194 = vst [vmem:[%s3713_s4 + $0x118] sm:$0xff] %v2158_v28  ;;  %v2298_v7 = vadd.f32 %v3532_v43, %v3508_v50  ;;  %v2299_v21 = vadd.f32 %v3536_v11, %v3508_v50  ;;  %v2300_v17 = vadd.f32 %v3540_v46, %v3508_v50  ;;  %v2324_v52 = vmul.f32 0.01, %v2288_v30 }
 0x3be   :  { %v2301_v6 = vadd.f32 %v3544_v9, %v3508_v50  ;;  %v2302_v63 = vadd.f32 %v2266_v5, %v3508_v50  ;;  %v2325_v45 = vmul.f32 0.01, %v2289_v54  ;;  %v2326_v33 = vmul.f32 0.01, %v2290_v41 }
 0x3bf   :  { %v2327_v22 = vmul.f32 0.01, %v2291_v61  ;;  %v2328_v39 = vmul.f32 0.01, %v2292_v4  ;;  %v2329_v43 = vmul.f32 0.01, %v2293_v49  ;;  %v2357_v23 = vmax.f32 %v2285_v2, %v2321_v24 }
 0x3c0   :  { %v2330_v62 = vmul.f32 0.01, %v2294_v31  ;;  %v2331_v11 = vmul.f32 0.01, %v2295_v25  ;;  %v2332_v38 = vmul.f32 0.01, %v2296_v42  ;;  %v2358_v18 = vmax.f32 %v2286_v37, %v2322_v44 }
 0x3c1   :  { %v2333_v46 = vmul.f32 0.01, %v2297_v51  ;;  %v2334_v0 = vmul.f32 0.01, %v2298_v7  ;;  %v2335_v48 = vmul.f32 0.01, %v2299_v21  ;;  %v2359_v9 = vmax.f32 %v2287_v58, %v2323_v53 }
 0x3c2   :  { %2488 = vst [vmem:[%s3713_s4 + $0x1b0] sm:$0xff] %v2357_v23  ;;  %v2336_v50 = vmul.f32 0.01, %v2300_v17  ;;  %v2337_v8 = vmul.f32 0.01, %v2301_v6  ;;  %v2360_v3 = vmax.f32 %v2288_v30, %v2324_v52  ;;  %2489 = vst [vmem:[%s3713_s4 + $0x1b8] sm:$0xff] %v2358_v18  ;;  %v2361_v60 = vmax.f32 %v2289_v54, %v2325_v45 }
 0x3c3   :  { %v2338_v47 = vmul.f32 0.01, %v2302_v63  ;;  %v2362_v57 = vmax.f32 %v2290_v41, %v2326_v33  ;;  %v2363_v13 = vmax.f32 %v2291_v61, %v2327_v22  ;;  %v2364_v14 = vmax.f32 %v2292_v4, %v2328_v39  ;;  %2490 = vst [vmem:[%s3713_s4 + $0x1c0] sm:$0xff] %v2359_v9 }
 0x3c4   :  { %v2365_v15 = vmax.f32 %v2293_v49, %v2329_v43  ;;  %v2366_v59 = vmax.f32 %v2294_v31, %v2330_v62  ;;  %v2367_v1 = vmax.f32 %v2295_v25, %v2331_v11  ;;  %v2368_v56 = vmax.f32 %v2296_v42, %v2332_v38  ;;  %2491 = vst [vmem:[%s3713_s4 + $0x1c8] sm:$0xff] %v2360_v3 }
 0x3c5   :  { %v2369_v40 = vmax.f32 %v2297_v51, %v2333_v46  ;;  %v2370_v12 = vmax.f32 %v2298_v7, %v2334_v0  ;;  %v2371_v55 = vmax.f32 %v2299_v21, %v2335_v48  ;;  %v2372_v35 = vmax.f32 %v2300_v17, %v2336_v50  ;;  %2492 = vst [vmem:[%s3713_s4 + $0x1d0] sm:$0xff] %v2361_v60 }
 0x3c6   :  { %2493 = vst [vmem:[%s3713_s4 + $0x1d8] sm:$0xff] %v2362_v57  ;;  %2494 = vst [vmem:[%s3713_s4 + $0x1e0] sm:$0xff] %v2363_v13  ;;  %v2373_v26 = vmax.f32 %v2301_v6, %v2337_v8  ;;  %v2374_v19 = vmax.f32 %v2302_v63, %v2338_v47 }
 0x3c7   :  { %2495 = vst [vmem:[%s3713_s4 + $0x1e8] sm:$0xff] %v2364_v14  ;;  %2496 = vst [vmem:[%s3713_s4 + $0x1f0] sm:$0xff] %v2365_v15 }
 0x3c8   :  { %2497 = vst [vmem:[%s3713_s4 + $0x1f8] sm:$0xff] %v2366_v59  ;;  %2498 = vst [vmem:[%s3713_s4 + $0x200] sm:$0xff] %v2367_v1 }
 0x3c9   :  { %2499 = vst [vmem:[%s3713_s4 + $0x208] sm:$0xff] %v2368_v56  ;;  %2500 = vst [vmem:[%s3713_s4 + $0x210] sm:$0xff] %v2369_v40 }
 0x3ca   :  { %2501 = vst [vmem:[%s3713_s4 + $0x218] sm:$0xff] %v2370_v12  ;;  %2502 = vst [vmem:[%s3713_s4 + $0x220] sm:$0xff] %v2371_v55 }
 0x3cb   :  { %2503 = vst [vmem:[%s3713_s4 + $0x228] sm:$0xff] %v2372_v35  ;;  %2504 = vst [vmem:[%s3713_s4 + $0x230] sm:$0xff] %v2373_v26 }
 0x3cc   :  { %2505 = vst [vmem:[%s3713_s4 + $0x238] sm:$0xff] %v2374_v19 }

</bundles_post_ra>
